<compile_context>
chip_gen: v7x
topology: tpu7x:2x2x1
jax: 0.10.0
libtpu: 0.0.40
codegen_flags: <defaults>
</compile_context>

<pallas_src>
import functools

import jax
import jax.numpy as jnp
from jax.experimental import pallas as pl
from jax.experimental.pallas import tpu as pltpu


HIDDEN = 4096  # fixed by the PyTorch module: nn.Linear(txt_feat_len, 4096)


def _round_up(x, m):
    return ((x + m - 1) // m) * m


# ---------------------------------------------------------------------------
# Fused kernel: feat = relu(x@w1+b1); hid = feat@w2+b2; code = tanh(alpha*hid)
# ---------------------------------------------------------------------------
def _txtnet_kernel(x_ref, w1_ref, b1_ref, w2_ref, b2_ref,
                   feat_ref, hid_ref, code_ref, *, alpha):
    z1 = jnp.dot(x_ref[...], w1_ref[...],
                 preferred_element_type=jnp.float32) + b1_ref[...]
    feat = jnp.maximum(z1, 0.0)
    feat_ref[...] = feat.astype(feat_ref.dtype)

    z2 = jnp.dot(feat.astype(w2_ref.dtype), w2_ref[...],
                 preferred_element_type=jnp.float32) + b2_ref[...]
    hid_ref[...] = z2.astype(hid_ref.dtype)
    code_ref[...] = jnp.tanh(alpha * z2).astype(code_ref.dtype)


# ---------------------------------------------------------------------------
# Wrapper
# ---------------------------------------------------------------------------
def txtnet_forward(x, params, alpha=1.0):
    M, K = x.shape
    H = params["w1_t"].shape[1]
    N = params["w2_t"].shape[1]

    # Pad batch to the f32 sublane count (8) and code_len to a full lane
    # width (128) for lane-dense stores; slice the padding off afterwards.
    Mp = _round_up(M, 8)
    Np = _round_up(N, 128)

    x_p = x
    if Mp != M:
        x_p = jnp.zeros((Mp, K), x.dtype).at[:M].set(x)

    w2_p, b2_p = params["w2_t"], params["b2"]
    if Np != N:
        w2_p = jnp.zeros((H, Np), w2_p.dtype).at[:, :N].set(w2_p)
        b2_p = jnp.zeros((Np,), b2_p.dtype).at[:N].set(b2_p)

    b1_2 = params["b1"].reshape(1, H)
    b2_2 = b2_p.reshape(1, Np)

    kernel = functools.partial(_txtnet_kernel, alpha=float(alpha))

    flops = 2 * Mp * K * H + 2 * Mp * H * Np
    bytes_accessed = 4 * (Mp * K + K * H + H + H * Np + Np
                          + Mp * H + 2 * Mp * Np)
    cost = pl.CostEstimate(flops=flops,
                           transcendentals=Mp * Np,
                           bytes_accessed=bytes_accessed)

    feat, hid, code = pl.pallas_call(
        kernel,
        out_shape=(jax.ShapeDtypeStruct((Mp, H), x.dtype),
                   jax.ShapeDtypeStruct((Mp, Np), x.dtype),
                   jax.ShapeDtypeStruct((Mp, Np), x.dtype)),
        in_specs=[pl.BlockSpec(memory_space=pltpu.MemorySpace.VMEM)] * 5,
        out_specs=(pl.BlockSpec(memory_space=pltpu.MemorySpace.VMEM),) * 3,
        cost_estimate=cost,
    )(x_p, params["w1_t"], b1_2, w2_p, b2_2)

    return feat[:M], hid[:M, :N], code[:M, :N]


# ---------------------------------------------------------------------------
# Params (PyTorch nn.Linear-style init), weights stored transposed
# ---------------------------------------------------------------------------
def init_txtnet_params(key, code_len, txt_feat_len):
    k1, k2, k3, k4 = jax.random.split(key, 4)
    s1 = 1.0 / jnp.sqrt(jnp.float32(txt_feat_len))
    s2 = 1.0 / jnp.sqrt(jnp.float32(HIDDEN))
    return {
        "w1_t": jax.random.uniform(k1, (txt_feat_len, HIDDEN), jnp.float32, -s1, s1),
        "b1":   jax.random.uniform(k2, (HIDDEN,), jnp.float32, -s1, s1),
        "w2_t": jax.random.uniform(k3, (HIDDEN, code_len), jnp.float32, -s2, s2),
        "b2":   jax.random.uniform(k4, (code_len,), jnp.float32, -s2, s2),
    }


if __name__ == "__main__":
    batch = 2
    txt_feat_len = 32
    code_len = 16
    alpha = 1.0

    key = jax.random.PRNGKey(0)
    kx, kp = jax.random.split(key)
    x = jax.random.normal(kx, (batch, txt_feat_len), jnp.float32)
    params = init_txtnet_params(kp, code_len, txt_feat_len)

    feat, hid, code = txtnet_forward(x, params, alpha=alpha)
    jax.block_until_ready((feat, hid, code))

    # reference check (plain JAX)
    feat_ref = jnp.maximum(x @ params["w1_t"] + params["b1"], 0.0)
    hid_ref = feat_ref @ params["w2_t"] + params["b2"]
    code_ref = jnp.tanh(alpha * hid_ref)
    assert feat.shape == (batch, HIDDEN)
    assert hid.shape == (batch, code_len)
    assert code.shape == (batch, code_len)
    assert jnp.allclose(feat, feat_ref, atol=1e-4, rtol=1e-4)
    assert jnp.allclose(hid, hid_ref, atol=1e-4, rtol=1e-4)
    assert jnp.allclose(code, code_ref, atol=1e-4, rtol=1e-4)

    print("KERNEL_OK")
</pallas_src>

<mosaic_0001>
module attributes {stable_mosaic.version = 11 : i64} {
  func.func @_txtnet_kernel(%arg0: memref<8x32xf32, #tpu.memory_space<vmem>>, %arg1: memref<32x4096xf32, #tpu.memory_space<vmem>>, %arg2: memref<1x4096xf32, #tpu.memory_space<vmem>>, %arg3: memref<4096x128xf32, #tpu.memory_space<vmem>>, %arg4: memref<1x128xf32, #tpu.memory_space<vmem>>, %arg5: memref<8x4096xf32, #tpu.memory_space<vmem>>, %arg6: memref<8x128xf32, #tpu.memory_space<vmem>>, %arg7: memref<8x128xf32, #tpu.memory_space<vmem>>) attributes {dimension_semantics = [], scalar_prefetch = 0 : i64, scratch_operands = 0 : i64, tpu.core_type = #tpu.core_type<tc>} {
    %c0 = arith.constant 0 : index
    %c0_0 = arith.constant 0 : index
    %0 = vector.load %arg0[%c0, %c0_0] : memref<8x32xf32, #tpu.memory_space<vmem>>, vector<8x32xf32>
    %c0_1 = arith.constant 0 : index
    %c0_2 = arith.constant 0 : index
    %1 = vector.load %arg1[%c0_1, %c0_2] : memref<32x4096xf32, #tpu.memory_space<vmem>>, vector<32x4096xf32>
    %cst = arith.constant dense<0.000000e+00> : vector<8x4096xf32>
    %2 = tpu.matmul %0, %1, %cst {dimension_numbers = #tpu.dot_dimension_numbers<[1], [0], [0], [1], [0, 0, 1, 1], [], []>} : vector<8x32xf32>, vector<32x4096xf32>, vector<8x4096xf32> -> vector<8x4096xf32>
    %c0_3 = arith.constant 0 : index
    %c0_4 = arith.constant 0 : index
    %3 = vector.load %arg2[%c0_3, %c0_4] : memref<1x4096xf32, #tpu.memory_space<vmem>>, vector<1x4096xf32>
    %4 = vector.broadcast %3 : vector<1x4096xf32> to vector<8x4096xf32>
    %5 = arith.addf %2, %4 : vector<8x4096xf32>
    %cst_5 = arith.constant 0.000000e+00 : f32
    %6 = vector.broadcast %cst_5 : f32 to vector<8x4096xf32>
    %7 = arith.maximumf %5, %6 : vector<8x4096xf32>
    %c0_6 = arith.constant 0 : index
    %c0_7 = arith.constant 0 : index
    %8 = vector.load %arg5[%c0_6, %c0_7] : memref<8x4096xf32, #tpu.memory_space<vmem>>, vector<8x4096xf32>
    tpu.vector_store %arg5[%c0_6, %c0_7], %7 {strides = array<i32>} : memref<8x4096xf32, #tpu.memory_space<vmem>>, vector<8x4096xf32>,
    %c0_8 = arith.constant 0 : index
    %c0_9 = arith.constant 0 : index
    %9 = vector.load %arg3[%c0_8, %c0_9] : memref<4096x128xf32, #tpu.memory_space<vmem>>, vector<4096x128xf32>
    %cst_10 = arith.constant dense<0.000000e+00> : vector<8x128xf32>
    %10 = tpu.matmul %7, %9, %cst_10 {dimension_numbers = #tpu.dot_dimension_numbers<[1], [0], [0], [1], [0, 0, 1, 1], [], []>} : vector<8x4096xf32>, vector<4096x128xf32>, vector<8x128xf32> -> vector<8x128xf32>
    %c0_11 = arith.constant 0 : index
    %c0_12 = arith.constant 0 : index
    %11 = vector.load %arg4[%c0_11, %c0_12] : memref<1x128xf32, #tpu.memory_space<vmem>>, vector<1x128xf32>
    %12 = vector.broadcast %11 : vector<1x128xf32> to vector<8x128xf32>
    %13 = arith.addf %10, %12 : vector<8x128xf32>
    %c0_13 = arith.constant 0 : index
    %c0_14 = arith.constant 0 : index
    %14 = vector.load %arg6[%c0_13, %c0_14] : memref<8x128xf32, #tpu.memory_space<vmem>>, vector<8x128xf32>
    tpu.vector_store %arg6[%c0_13, %c0_14], %13 {strides = array<i32>} : memref<8x128xf32, #tpu.memory_space<vmem>>, vector<8x128xf32>,
    %cst_15 = arith.constant 1.000000e+00 : f32
    %15 = vector.broadcast %cst_15 : f32 to vector<8x128xf32>
    %16 = arith.mulf %15, %13 : vector<8x128xf32>
    %17 = math.tanh %16 : vector<8x128xf32>
    %c0_16 = arith.constant 0 : index
    %c0_17 = arith.constant 0 : index
    %18 = vector.load %arg7[%c0_16, %c0_17] : memref<8x128xf32, #tpu.memory_space<vmem>>, vector<8x128xf32>
    tpu.vector_store %arg7[%c0_16, %c0_17], %17 {strides = array<i32>} : memref<8x128xf32, #tpu.memory_space<vmem>>, vector<8x128xf32>,
    return
  }
}

</mosaic_0001>

<bundles_post_ra>
// kernel: tpu_custom_call.1
= control target key start
LH: loop header
LB: loop body
LE: loop exit
PB: predicated region body
PF: predicated region fallthrough
CT: control target
= control target key end

     0   :  { %13 = vsyncpa [#allocation3], 0  ;;  %s5113_s0 = inlined_call_operand.hbm [shape: f32[8,32], index: 0, kind: input, shape index: {}]   ;;  %s5114_s1 = inlined_call_operand.hbm [shape: f32[32,4096], index: 1, kind: input, shape index: {}]   ;;  %s5115_s2 = inlined_call_operand.hbm [shape: f32[1,4096], index: 2, kind: input, shape index: {}]   ;;  %s5116_s3 = inlined_call_operand.hbm [shape: f32[4096,128], index: 3, kind: input, shape index: {}]   ;;  %s5117_s4 = inlined_call_operand.hbm [shape: f32[1,128], index: 4, kind: input, shape index: {}]   ;;  %s5118_s5 = inlined_call_operand.hbm [shape: f32[8,4096], index: 5, kind: output, shape index: {0}]   ;;  %s5119_s6 = inlined_call_operand.hbm [shape: f32[8,128], index: 6, kind: output, shape index: {1}]   ;;  %s5120_s7 = inlined_call_operand.hbm [shape: f32[8,128], index: 7, kind: output, shape index: {2}]  }
   0x1   :  { %14 = vsyncpa [#allocation6], 0 }
   0x2   :  { %15 = vsyncpa [#allocation9], 0 }
   0x3   :  { %16 = vsyncpa [#allocation4], 0 }
   0x4   :  { %17 = vsyncpa [#allocation13], 0  ;;  %s4700_s24 = smov [#allocation5]   ;;  %s4514_s28 = scalar_lea.hbm %s5114_s1, 16384 }
   0x5   :  { %s33_s25 = sshll.u32 %s4700_s24, 4  ;;  %p4515_p0 = scmp.ne.s32.totalorder %s5114_s1, %s4514_s28  ;;  %s34_s25 = int_to_ptr.vmem [resolvable:$true] %s33_s25 }
   0x6   :  { %p4518_p1 = scmp.lt.u32.totalorder %s4514_s28, %s5114_s1 }
   0x8   :  { %p4520_p2 = pnand %p4518_p1, %p4515_p0 }
   0xa   :  { %4523 = shalt.err (!%p4520_p2)
}
   0xb   :  { %s4524_s10 = scalar_lea.vmem %s34_s25, 16384  ;;  %p4529_p4 = scmp.lt.s32.totalorder %s34_s25, %s34_s25 }
   0xc   :  { %p4525_p3 = scmp.ne.s32.totalorder %s34_s25, %s4524_s10  ;;  %p4530_p5 = scmp.lt.s32.totalorder %s4524_s10, %s4524_s10 }
   0xe   :  { %p4531_p6 = por %p4530_p5, %p4529_p4 }
  0x10   :  { %p4532_p7 = pnand %p4531_p6, %p4525_p3 }
  0x12   :  { %4535 = shalt.err (!%p4532_p7)
}
  0x13   :  { %s4701_s11 = smov 4096   ;;  %s4702_s12 = smov 256  }
  0x14   :  { %39 = dma.hbm_to_vmem [thread:$0]  %s5114_s1, 16384, %s34_s25, [#allocation6], %s4701_s11, %s4701_s11, %s4702_s12  }
  0x15   :  { %s4703_s15 = smov [#allocation8]   ;;  %s4536_s19 = scalar_lea.hbm %s5116_s3, 65536 }
  0x16   :  { %s55_s16 = sshll.u32 %s4703_s15, 4  ;;  %p4537_p8 = scmp.ne.s32.totalorder %s5116_s3, %s4536_s19  ;;  %s56_s16 = int_to_ptr.vmem [resolvable:$true] %s55_s16 }
  0x17   :  { %p4540_p9 = scmp.lt.u32.totalorder %s4536_s19, %s5116_s3 }
  0x19   :  { %p4542_p10 = pnand %p4540_p9, %p4537_p8 }
  0x1b   :  { %4545 = shalt.err (!%p4542_p10)
}
  0x1c   :  { %s4546_s24 = scalar_lea.vmem %s56_s16, 65536  ;;  %p4551_p12 = scmp.lt.s32.totalorder %s56_s16, %s56_s16 }
  0x1d   :  { %p4547_p11 = scmp.ne.s32.totalorder %s56_s16, %s4546_s24  ;;  %p4552_p13 = scmp.lt.s32.totalorder %s4546_s24, %s4546_s24 }
  0x1f   :  { %p4553_p0 = por %p4552_p13, %p4551_p12 }
  0x21   :  { %p4554_p1 = pnand %p4553_p0, %p4547_p11 }
  0x23   :  { %4557 = shalt.err (!%p4554_p1)
}
  0x24   :  { %s4704_s1 = smov 128   ;;  %s4705_s25 = smov 8  }
  0x25   :  { %61 = dma.hbm_to_vmem [thread:$0]  %s5116_s3, 65536, %s56_s16, [#allocation9], %s4704_s1, %s4704_s1, %s4705_s25  }
  0x26   :  { %s4706_s28 = smov [#allocation2]   ;;  %s4707_s30 = smov [#allocation7]  }
  0x27   :  { %s24_s29 = sshll.u32 %s4706_s28, 4  ;;  %s46_s8 = sshll.u32 %s4707_s30, 4  ;;  %s25_s29 = int_to_ptr.vmem [resolvable:$true] %s24_s29  ;;  %s47_s8 = int_to_ptr.vmem [resolvable:$true] %s46_s8 }
  0x28   :  { %s4558_s11 = scalar_lea.hbm %s5113_s0, 128 }
  0x29   :  { %p4559_p2 = scmp.ne.s32.totalorder %s5113_s0, %s4558_s11  ;;  %p4562_p3 = scmp.lt.u32.totalorder %s4558_s11, %s5113_s0 }
  0x2b   :  { %p4564_p4 = pnand %p4562_p3, %p4559_p2 }
  0x2d   :  { %4567 = shalt.err (!%p4564_p4)
}
  0x2e   :  { %s4568_s3 = scalar_lea.vmem %s25_s29, 128  ;;  %p4573_p6 = scmp.lt.s32.totalorder %s25_s29, %s25_s29 }
  0x2f   :  { %p4569_p5 = scmp.ne.s32.totalorder %s25_s29, %s4568_s3  ;;  %p4574_p7 = scmp.lt.s32.totalorder %s4568_s3, %s4568_s3 }
  0x31   :  { %p4575_p8 = por %p4574_p7, %p4573_p6 }
  0x33   :  { %p4576_p9 = pnand %p4575_p8, %p4569_p5 }
  0x35   :  { %4579 = shalt.err (!%p4576_p9)
}
  0x36   :  { %27 = dma.hbm_to_vmem [thread:$0]  %s5113_s0, 128, %s25_s29, [#allocation3]  }
  0x37   :  { %s4580_s20 = scalar_lea.hbm %s5115_s2, 512 }
  0x38   :  { %p4581_p10 = scmp.ne.s32.totalorder %s5115_s2, %s4580_s20  ;;  %p4584_p11 = scmp.lt.u32.totalorder %s4580_s20, %s5115_s2 }
  0x3a   :  { %p4586_p12 = pnand %p4584_p11, %p4581_p10 }
  0x3c   :  { %4589 = shalt.err (!%p4586_p12)
}
  0x3d   :  { %s4590_s1 = scalar_lea.vmem %s47_s8, 512  ;;  %p4595_p0 = scmp.lt.s32.totalorder %s47_s8, %s47_s8 }
  0x3e   :  { %p4591_p13 = scmp.ne.s32.totalorder %s47_s8, %s4590_s1  ;;  %p4596_p1 = scmp.lt.s32.totalorder %s4590_s1, %s4590_s1 }
  0x40   :  { %p4597_p2 = por %p4596_p1, %p4595_p0 }
  0x42   :  { %p4598_p3 = pnand %p4597_p2, %p4591_p13 }
  0x44   :  { %4601 = shalt.err (!%p4598_p3)
}
  0x45   :  { %49 = dma.hbm_to_vmem [thread:$0]  %s5115_s2, 512, %s47_s8, [#allocation6]  }
  0x46   :  { %s4708_s26 = smov [#allocation10]   ;;  %s4602_s30 = scalar_lea.hbm %s5117_s4, 16 }
  0x47   :  { %s68_s27 = sshll.u32 %s4708_s26, 4  ;;  %p4603_p4 = scmp.ne.s32.totalorder %s5117_s4, %s4602_s30  ;;  %s69_s27 = int_to_ptr.vmem [resolvable:$true] %s68_s27 }
  0x48   :  { %p4606_p5 = scmp.lt.u32.totalorder %s4602_s30, %s5117_s4 }
  0x4a   :  { %p4608_p6 = pnand %p4606_p5, %p4603_p4 }
  0x4c   :  { %4611 = shalt.err (!%p4608_p6)
}
  0x4d   :  { %s4612_s13 = scalar_lea.vmem %s69_s27, 16  ;;  %s4616_s2 = scalar_lea.vmem %s69_s27, 32 }
  0x4e   :  { %p4613_p7 = scmp.ne.s32.totalorder %s69_s27, %s4612_s13  ;;  %p4617_p8 = scmp.lt.s32.totalorder %s69_s27, %s69_s27 }
  0x4f   :  { %p4618_p9 = scmp.lt.s32.totalorder %s4616_s2, %s4612_s13 }
  0x51   :  { %p4619_p10 = por %p4618_p9, %p4617_p8 }
  0x53   :  { %p4620_p11 = pnand %p4619_p10, %p4613_p7 }
  0x55   :  { %4623 = shalt.err (!%p4620_p11)
}
  0x56   :  { %71 = dma.hbm_to_vmem [thread:$0]  %s5117_s4, 16, %s69_s27, [#allocation9]  }
  0x57   :  { %4690 = dma.done.wait [#allocation3], 128  }
  0x58   :  { %4691 = vsyncadd [#allocation3], 4294967168 }
  0x59   :  { %4692 = dma.done.wait [#allocation6], 16896  }
  0x5a   :  { %4693 = vsyncadd [#allocation6], 4294950400 }
  0x5b   :  { %4694 = dma.done.wait [#allocation9], 65552  }
  0x5c   :  { %4695 = vsyncadd [#allocation9], 4294901744  ;;  %v4709_v0 = vmov 0.0   ;;  %v89_v1 = vld [vmem:[#allocation5 + $0x8] sm:$0xff]  ;;  %v91_v3 = vld [vmem:[#allocation5 + $0x18] sm:$0xff]  ;;  %vm384_vm0 = vcmask 261120  }
  0x5d   :  { %452 = vmatprep.mubr.f32.mxu0 %v4709_v0  ;;  %523 = vmatprep.mubr.f32.mxu1 %v4709_v0  ;;  %v121_v2 = vld [vmem:[#allocation5 + $0x108] sm:$0xff]  ;;  %v123_v5 = vld [vmem:[#allocation5 + $0x118] sm:$0xff]  ;;  %v88_v6 = vld [vmem:[#allocation5] sm:$0xff]  ;;  %s4710_s4 = smov [#allocation11]  }
  0x5e   :  { %v3851_v4 = vpack.c.bf16 %v121_v2, %v89_v1  ;;  %v120_v7 = vld [vmem:[#allocation5 + $0x100] sm:$0xff]  ;;  %v3859_v8 = vpack.c.bf16 %v123_v5, %v91_v3  ;;  %v90_v10 = vld [vmem:[#allocation5 + $0x10] sm:$0xff]  ;;  %v153_v12 = vld [vmem:[#allocation5 + $0x208] sm:$0xff]  ;;  %s3236_s15 = sshll.u32 %s4710_s4, 4  ;;  %s3237_s15 = int_to_ptr.vmem [resolvable:$true] %s3236_s15 }
  0x5f   :  { %v3853_v9 = vpack.c.bf16 %v120_v7, %v88_v6  ;;  %v122_v11 = vld [vmem:[#allocation5 + $0x110] sm:$0xff]  ;;  %v185_v14 = vld [vmem:[#allocation5 + $0x308] sm:$0xff]  ;;  %v155_v15 = vld [vmem:[#allocation5 + $0x218] sm:$0xff]  ;;  %s4624_s3 = scalar_lea.vmem %s3237_s15, 4096  ;;  %p4629_p13 = scmp.lt.s32.totalorder %s3237_s15, %s3237_s15 }
  0x60   :  { %3852 = vmatprep.subr.bf16.mxu0 %v3851_v4  ;;  %v3861_v13 = vpack.c.bf16 %v122_v11, %v90_v10  ;;  %v187_v16 = vld [vmem:[#allocation5 + $0x318] sm:$0xff]  ;;  %3860 = vmatprep.subr.bf16.mxu1 %v3859_v8  ;;  %v3855_v17 = vpack.c.bf16 %v185_v14, %v153_v12  ;;  %v152_v19 = vld [vmem:[#allocation5 + $0x200] sm:$0xff]  ;;  %v154_v21 = vld [vmem:[#allocation5 + $0x210] sm:$0xff]  ;;  %p4625_p12 = scmp.ne.s32.totalorder %s3237_s15, %s4624_s3  ;;  %p4630_p0 = scmp.lt.s32.totalorder %s4624_s3, %s4624_s3 }
  0x61   :  { %3854 = vmatpush1.bf16.msra.mxu0 %v3853_v9  ;;  %v3863_v18 = vpack.c.bf16 %v187_v16, %v155_v15  ;;  %v184_v20 = vld [vmem:[#allocation5 + $0x300] sm:$0xff]  ;;  %v186_v23 = vld [vmem:[#allocation5 + $0x310] sm:$0xff]  ;;  %v93_v24 = vld [vmem:[#allocation5 + $0x28] sm:$0xff] }
  0x62   :  { %3862 = vmatpush1.bf16.msra.mxu1 %v3861_v13  ;;  %v3857_v22 = vpack.c.bf16 %v184_v20, %v152_v19  ;;  %3856 = vmatprep.subr.bf16.mxu0 %v3855_v17  ;;  %v3865_v25 = vpack.c.bf16 %v186_v23, %v154_v21  ;;  %v4815_v26 = vld [vmem:[#allocation2] sm:$0xff]  ;;  %v125_v27 = vld [vmem:[#allocation5 + $0x128] sm:$0xff]  ;;  %v92_v32 = vld [vmem:[#allocation5 + $0x20] sm:$0xff]  ;;  %p4631_p1 = por %p4630_p0, %p4629_p13 }
  0x63   :  { %3864 = vmatprep.subr.bf16.mxu1 %v3863_v18  ;;  %v95_v28 = vld [vmem:[#allocation5 + $0x38] sm:$0xff]  ;;  %v3867_v30 = vpack.c.bf16 %v125_v27, %v93_v24  ;;  %v124_v33 = vld [vmem:[#allocation5 + $0x120] sm:$0xff]  ;;  %v94_v34 = vld [vmem:[#allocation5 + $0x30] sm:$0xff] }
  0x64   :  { %v127_v29 = vld [vmem:[#allocation5 + $0x138] sm:$0xff]  ;;  %v3869_v35 = vpack.c.bf16 %v124_v33, %v92_v32  ;;  %v126_v36 = vld [vmem:[#allocation5 + $0x130] sm:$0xff]  ;;  %v157_v37 = vld [vmem:[#allocation5 + $0x228] sm:$0xff]  ;;  %p4632_p2 = pnand %p4631_p1, %p4625_p12 }
  0x65   :  { %v3875_v31 = vpack.c.bf16 %v127_v29, %v95_v28  ;;  %3858 = vmatpush1.bf16.msra.mxu0 %v3857_v22  ;;  %v189_v38 = vld [vmem:[#allocation5 + $0x328] sm:$0xff]  ;;  %v3877_v39 = vpack.c.bf16 %v126_v36, %v94_v34  ;;  %v159_v41 = vld [vmem:[#allocation5 + $0x238] sm:$0xff]  ;;  %v156_v43 = vld [vmem:[#allocation5 + $0x220] sm:$0xff] }
  0x66   :  { %3866 = vmatpush1.bf16.msra.mxu1 %v3865_v25  ;;  %3868 = vmatprep.subr.bf16.mxu0 %v3867_v30  ;;  %v3871_v40 = vpack.c.bf16 %v189_v38, %v157_v37  ;;  %v191_v42 = vld [vmem:[#allocation5 + $0x338] sm:$0xff]  ;;  %v188_v45 = vld [vmem:[#allocation5 + $0x320] sm:$0xff]  ;;  %v158_v46 = vld [vmem:[#allocation5 + $0x230] sm:$0xff] }
  0x67   :  { %3876 = vmatprep.subr.bf16.mxu1 %v3875_v31  ;;  %v3879_v44 = vpack.c.bf16 %v191_v42, %v159_v41  ;;  %v190_v47 = vld [vmem:[#allocation5 + $0x330] sm:$0xff]  ;;  %v97_v48 = vld [vmem:[#allocation5 + $0x48] sm:$0xff]  ;;  %v99_v50 = vld [vmem:[#allocation5 + $0x58] sm:$0xff]  ;;  %v3873_v51 = vpack.c.bf16 %v188_v45, %v156_v43 }
  0x68   :  { %3274 = vmatmul.mubr.msk.f32.vlgmr.msra.gmra.mrb[0].mxu0 %vm384_vm0, %v4815_v26  ;;  %v129_v49 = vld [vmem:[#allocation5 + $0x148] sm:$0xff]  ;;  %v131_v52 = vld [vmem:[#allocation5 + $0x158] sm:$0xff]  ;;  %v3881_v53 = vpack.c.bf16 %v190_v47, %v158_v46  ;;  %v96_v55 = vld [vmem:[#allocation5 + $0x40] sm:$0xff] }
  0x69   :  { %3275 = vmatmul.mubr.msk.f32.vlgmr.msra.gmra.mrb[0].mxu1 %vm384_vm0, %v4815_v26  ;;  %3870 = vmatpush1.bf16.msra.mxu0 %v3869_v35  ;;  %v3883_v54 = vpack.c.bf16 %v129_v49, %v97_v48  ;;  %v128_v56 = vld [vmem:[#allocation5 + $0x140] sm:$0xff]  ;;  %v98_v57 = vld [vmem:[#allocation5 + $0x50] sm:$0xff]  ;;  %v3891_v58 = vpack.c.bf16 %v131_v52, %v99_v50  ;;  %v161_v60 = vld [vmem:[#allocation5 + $0x248] sm:$0xff] }
  0x6a   :  { %3878 = vmatpush1.bf16.msra.mxu1 %v3877_v39  ;;  %3872 = vmatprep.subr.bf16.mxu0 %v3871_v40  ;;  %v130_v59 = vld [vmem:[#allocation5 + $0x150] sm:$0xff]  ;;  %v193_v61 = vld [vmem:[#allocation5 + $0x348] sm:$0xff]  ;;  %v163_v62 = vld [vmem:[#allocation5 + $0x258] sm:$0xff]  ;;  %v3885_v1 = vpack.c.bf16 %v128_v56, %v96_v55 }
  0x6b   :  { %3880 = vmatprep.subr.bf16.mxu1 %v3879_v44  ;;  %594 = vmatprep.mubr.f32.mxu0 %v4709_v0  ;;  %v195_v63 = vld [vmem:[#allocation5 + $0x358] sm:$0xff]  ;;  %v3893_v2 = vpack.c.bf16 %v130_v59, %v98_v57  ;;  %v3887_v3 = vpack.c.bf16 %v193_v61, %v161_v60  ;;  %v160_v4 = vld [vmem:[#allocation5 + $0x240] sm:$0xff]  ;;  %v162_v6 = vld [vmem:[#allocation5 + $0x250] sm:$0xff] }
  0x6c   :  { %665 = vmatprep.mubr.f32.mxu1 %v4709_v0  ;;  %v192_v5 = vld [vmem:[#allocation5 + $0x340] sm:$0xff]  ;;  %v3895_v7 = vpack.c.bf16 %v195_v63, %v163_v62  ;;  %v194_v8 = vld [vmem:[#allocation5 + $0x350] sm:$0xff]  ;;  %v101_v9 = vld [vmem:[#allocation5 + $0x68] sm:$0xff] }
  0x6d   :  { %3874 = vmatpush1.bf16.msra.mxu0 %v3873_v51  ;;  %v133_v10 = vld [vmem:[#allocation5 + $0x168] sm:$0xff]  ;;  %v103_v11 = vld [vmem:[#allocation5 + $0x78] sm:$0xff]  ;;  %v3889_v13 = vpack.c.bf16 %v192_v5, %v160_v4  ;;  %v3897_v14 = vpack.c.bf16 %v194_v8, %v162_v6  ;;  %v100_v16 = vld [vmem:[#allocation5 + $0x60] sm:$0xff] }
  0x6e   :  { %3882 = vmatpush1.bf16.msra.mxu1 %v3881_v53  ;;  %3884 = vmatprep.subr.bf16.mxu0 %v3883_v54  ;;  %v135_v12 = vld [vmem:[#allocation5 + $0x178] sm:$0xff]  ;;  %v3899_v15 = vpack.c.bf16 %v133_v10, %v101_v9  ;;  %v132_v17 = vld [vmem:[#allocation5 + $0x160] sm:$0xff]  ;;  %v102_v18 = vld [vmem:[#allocation5 + $0x70] sm:$0xff] }
  0x6f   :  { %3892 = vmatprep.subr.bf16.mxu1 %v3891_v58  ;;  %v3907_v19 = vpack.c.bf16 %v135_v12, %v103_v11  ;;  %v134_v20 = vld [vmem:[#allocation5 + $0x170] sm:$0xff]  ;;  %v165_v21 = vld [vmem:[#allocation5 + $0x268] sm:$0xff]  ;;  %v167_v23 = vld [vmem:[#allocation5 + $0x278] sm:$0xff]  ;;  %v3901_v25 = vpack.c.bf16 %v132_v17, %v100_v16 }
  0x70   :  { %3276 = vmatmul.mubr.msk.f32.vlgmr.msra.gmra.mrb[2].mxu0 %vm384_vm0, %v4815_v26  ;;  %v197_v22 = vld [vmem:[#allocation5 + $0x368] sm:$0xff]  ;;  %v199_v24 = vld [vmem:[#allocation5 + $0x378] sm:$0xff]  ;;  %v3909_v27 = vpack.c.bf16 %v134_v20, %v102_v18  ;;  %v164_v29 = vld [vmem:[#allocation5 + $0x260] sm:$0xff] }
  0x71   :  { %3277 = vmatmul.mubr.msk.f32.vlgmr.msra.gmra.mrb[2].mxu1 %vm384_vm0, %v4815_v26  ;;  %3886 = vmatpush1.bf16.msra.mxu0 %v3885_v1  ;;  %v3903_v28 = vpack.c.bf16 %v197_v22, %v165_v21  ;;  %v196_v30 = vld [vmem:[#allocation5 + $0x360] sm:$0xff]  ;;  %v166_v31 = vld [vmem:[#allocation5 + $0x270] sm:$0xff]  ;;  %v3911_v32 = vpack.c.bf16 %v199_v24, %v167_v23  ;;  %v105_v34 = vld [vmem:[#allocation5 + $0x88] sm:$0xff] }
  0x72   :  { %3894 = vmatpush1.bf16.msra.mxu1 %v3893_v2  ;;  %3888 = vmatprep.subr.bf16.mxu0 %v3887_v3  ;;  %v198_v33 = vld [vmem:[#allocation5 + $0x370] sm:$0xff]  ;;  %v137_v35 = vld [vmem:[#allocation5 + $0x188] sm:$0xff]  ;;  %v107_v36 = vld [vmem:[#allocation5 + $0x98] sm:$0xff]  ;;  %v3905_v38 = vpack.c.bf16 %v196_v30, %v164_v29 }
  0x73   :  { %3896 = vmatprep.subr.bf16.mxu1 %v3895_v7  ;;  %736 = vmatprep.mubr.f32.mxu0 %v4709_v0  ;;  %v139_v37 = vld [vmem:[#allocation5 + $0x198] sm:$0xff]  ;;  %v3913_v39 = vpack.c.bf16 %v198_v33, %v166_v31  ;;  %v3915_v40 = vpack.c.bf16 %v137_v35, %v105_v34  ;;  %v104_v41 = vld [vmem:[#allocation5 + $0x80] sm:$0xff]  ;;  %v106_v43 = vld [vmem:[#allocation5 + $0x90] sm:$0xff] }
  0x74   :  { %807 = vmatprep.mubr.f32.mxu1 %v4709_v0  ;;  %v136_v42 = vld [vmem:[#allocation5 + $0x180] sm:$0xff]  ;;  %v3923_v44 = vpack.c.bf16 %v139_v37, %v107_v36  ;;  %v138_v45 = vld [vmem:[#allocation5 + $0x190] sm:$0xff]  ;;  %v169_v46 = vld [vmem:[#allocation5 + $0x288] sm:$0xff] }
  0x75   :  { %3890 = vmatpush1.bf16.msra.mxu0 %v3889_v13  ;;  %v201_v47 = vld [vmem:[#allocation5 + $0x388] sm:$0xff]  ;;  %v171_v48 = vld [vmem:[#allocation5 + $0x298] sm:$0xff]  ;;  %v3917_v50 = vpack.c.bf16 %v136_v42, %v104_v41  ;;  %v3925_v51 = vpack.c.bf16 %v138_v45, %v106_v43  ;;  %v168_v53 = vld [vmem:[#allocation5 + $0x280] sm:$0xff] }
  0x76   :  { %3898 = vmatpush1.bf16.msra.mxu1 %v3897_v14  ;;  %3900 = vmatprep.subr.bf16.mxu0 %v3899_v15  ;;  %v203_v49 = vld [vmem:[#allocation5 + $0x398] sm:$0xff]  ;;  %v3919_v52 = vpack.c.bf16 %v201_v47, %v169_v46  ;;  %v200_v54 = vld [vmem:[#allocation5 + $0x380] sm:$0xff]  ;;  %v170_v55 = vld [vmem:[#allocation5 + $0x290] sm:$0xff] }
  0x77   :  { %3908 = vmatprep.subr.bf16.mxu1 %v3907_v19  ;;  %v3927_v56 = vpack.c.bf16 %v203_v49, %v171_v48  ;;  %v202_v57 = vld [vmem:[#allocation5 + $0x390] sm:$0xff]  ;;  %v109_v58 = vld [vmem:[#allocation5 + $0xa8] sm:$0xff]  ;;  %v111_v60 = vld [vmem:[#allocation5 + $0xb8] sm:$0xff]  ;;  %v3921_v62 = vpack.c.bf16 %v200_v54, %v168_v53 }
  0x78   :  { %3278 = vmatmul.mubr.msk.f32.vlgmr.msra.gmra.mrb[4].mxu0 %vm384_vm0, %v4815_v26  ;;  %v141_v59 = vld [vmem:[#allocation5 + $0x1a8] sm:$0xff]  ;;  %v143_v61 = vld [vmem:[#allocation5 + $0x1b8] sm:$0xff]  ;;  %v3929_v63 = vpack.c.bf16 %v202_v57, %v170_v55  ;;  %v108_v2 = vld [vmem:[#allocation5 + $0xa0] sm:$0xff] }
  0x79   :  { %3279 = vmatmul.mubr.msk.f32.vlgmr.msra.gmra.mrb[4].mxu1 %vm384_vm0, %v4815_v26  ;;  %3902 = vmatpush1.bf16.msra.mxu0 %v3901_v25  ;;  %v3931_v1 = vpack.c.bf16 %v141_v59, %v109_v58  ;;  %v140_v3 = vld [vmem:[#allocation5 + $0x1a0] sm:$0xff]  ;;  %v110_v4 = vld [vmem:[#allocation5 + $0xb0] sm:$0xff]  ;;  %v3939_v5 = vpack.c.bf16 %v143_v61, %v111_v60  ;;  %v173_v7 = vld [vmem:[#allocation5 + $0x2a8] sm:$0xff] }
  0x7a   :  { %3910 = vmatpush1.bf16.msra.mxu1 %v3909_v27  ;;  %3904 = vmatprep.subr.bf16.mxu0 %v3903_v28  ;;  %v142_v6 = vld [vmem:[#allocation5 + $0x1b0] sm:$0xff]  ;;  %v205_v8 = vld [vmem:[#allocation5 + $0x3a8] sm:$0xff]  ;;  %v175_v9 = vld [vmem:[#allocation5 + $0x2b8] sm:$0xff]  ;;  %v3933_v11 = vpack.c.bf16 %v140_v3, %v108_v2 }
  0x7b   :  { %3912 = vmatprep.subr.bf16.mxu1 %v3911_v32  ;;  %878 = vmatprep.mubr.f32.mxu0 %v4709_v0  ;;  %v207_v10 = vld [vmem:[#allocation5 + $0x3b8] sm:$0xff]  ;;  %v3941_v12 = vpack.c.bf16 %v142_v6, %v110_v4  ;;  %v3935_v13 = vpack.c.bf16 %v205_v8, %v173_v7  ;;  %v172_v14 = vld [vmem:[#allocation5 + $0x2a0] sm:$0xff]  ;;  %v174_v16 = vld [vmem:[#allocation5 + $0x2b0] sm:$0xff] }
  0x7c   :  { %949 = vmatprep.mubr.f32.mxu1 %v4709_v0  ;;  %v204_v15 = vld [vmem:[#allocation5 + $0x3a0] sm:$0xff]  ;;  %v3943_v17 = vpack.c.bf16 %v207_v10, %v175_v9  ;;  %v206_v18 = vld [vmem:[#allocation5 + $0x3b0] sm:$0xff]  ;;  %v113_v19 = vld [vmem:[#allocation5 + $0xc8] sm:$0xff] }
  0x7d   :  { %3906 = vmatpush1.bf16.msra.mxu0 %v3905_v38  ;;  %v145_v20 = vld [vmem:[#allocation5 + $0x1c8] sm:$0xff]  ;;  %v115_v21 = vld [vmem:[#allocation5 + $0xd8] sm:$0xff]  ;;  %v3937_v23 = vpack.c.bf16 %v204_v15, %v172_v14  ;;  %v3945_v24 = vpack.c.bf16 %v206_v18, %v174_v16  ;;  %v112_v27 = vld [vmem:[#allocation5 + $0xc0] sm:$0xff] }
  0x7e   :  { %3914 = vmatpush1.bf16.msra.mxu1 %v3913_v39  ;;  %3916 = vmatprep.subr.bf16.mxu0 %v3915_v40  ;;  %v147_v22 = vld [vmem:[#allocation5 + $0x1d8] sm:$0xff]  ;;  %v3947_v25 = vpack.c.bf16 %v145_v20, %v113_v19  ;;  %v144_v28 = vld [vmem:[#allocation5 + $0x1c0] sm:$0xff]  ;;  %v114_v29 = vld [vmem:[#allocation5 + $0xd0] sm:$0xff] }
  0x7f   :  { %3924 = vmatprep.subr.bf16.mxu1 %v3923_v44  ;;  %v3955_v30 = vpack.c.bf16 %v147_v22, %v115_v21  ;;  %v146_v31 = vld [vmem:[#allocation5 + $0x1d0] sm:$0xff]  ;;  %v177_v32 = vld [vmem:[#allocation5 + $0x2c8] sm:$0xff]  ;;  %v179_v34 = vld [vmem:[#allocation5 + $0x2d8] sm:$0xff]  ;;  %v3949_v36 = vpack.c.bf16 %v144_v28, %v112_v27 }
  0x80   :  { %3280 = vmatmul.mubr.msk.f32.vlgmr.msra.gmra.mrb[6].mxu0 %vm384_vm0, %v4815_v26  ;;  %v209_v33 = vld [vmem:[#allocation5 + $0x3c8] sm:$0xff]  ;;  %v211_v35 = vld [vmem:[#allocation5 + $0x3d8] sm:$0xff]  ;;  %v3957_v37 = vpack.c.bf16 %v146_v31, %v114_v29  ;;  %v176_v39 = vld [vmem:[#allocation5 + $0x2c0] sm:$0xff] }
  0x81   :  { %3281 = vmatmul.mubr.msk.f32.vlgmr.msra.gmra.mrb[6].mxu1 %vm384_vm0, %v4815_v26  ;;  %3918 = vmatpush1.bf16.msra.mxu0 %v3917_v50  ;;  %v3951_v38 = vpack.c.bf16 %v209_v33, %v177_v32  ;;  %v208_v40 = vld [vmem:[#allocation5 + $0x3c0] sm:$0xff]  ;;  %v178_v41 = vld [vmem:[#allocation5 + $0x2d0] sm:$0xff]  ;;  %v3959_v42 = vpack.c.bf16 %v211_v35, %v179_v34  ;;  %v117_v44 = vld [vmem:[#allocation5 + $0xe8] sm:$0xff] }
  0x82   :  { %3926 = vmatpush1.bf16.msra.mxu1 %v3925_v51  ;;  %3920 = vmatprep.subr.bf16.mxu0 %v3919_v52  ;;  %v210_v43 = vld [vmem:[#allocation5 + $0x3d0] sm:$0xff]  ;;  %v149_v45 = vld [vmem:[#allocation5 + $0x1e8] sm:$0xff]  ;;  %v119_v46 = vld [vmem:[#allocation5 + $0xf8] sm:$0xff]  ;;  %v3953_v48 = vpack.c.bf16 %v208_v40, %v176_v39 }
  0x83   :  { %3928 = vmatprep.subr.bf16.mxu1 %v3927_v56  ;;  %1020 = vmatprep.mubr.f32.mxu0 %v4709_v0  ;;  %v151_v47 = vld [vmem:[#allocation5 + $0x1f8] sm:$0xff]  ;;  %v3961_v49 = vpack.c.bf16 %v210_v43, %v178_v41  ;;  %v3963_v50 = vpack.c.bf16 %v149_v45, %v117_v44  ;;  %v116_v51 = vld [vmem:[#allocation5 + $0xe0] sm:$0xff]  ;;  %v118_v53 = vld [vmem:[#allocation5 + $0xf0] sm:$0xff] }
  0x84   :  { %1091 = vmatprep.mubr.f32.mxu1 %v4709_v0  ;;  %v148_v52 = vld [vmem:[#allocation5 + $0x1e0] sm:$0xff]  ;;  %v3971_v54 = vpack.c.bf16 %v151_v47, %v119_v46  ;;  %v150_v55 = vld [vmem:[#allocation5 + $0x1f0] sm:$0xff]  ;;  %v181_v56 = vld [vmem:[#allocation5 + $0x2e8] sm:$0xff] }
  0x85   :  { %3922 = vmatpush1.bf16.msra.mxu0 %v3921_v62  ;;  %v213_v57 = vld [vmem:[#allocation5 + $0x3e8] sm:$0xff]  ;;  %v183_v58 = vld [vmem:[#allocation5 + $0x2f8] sm:$0xff]  ;;  %v3965_v60 = vpack.c.bf16 %v148_v52, %v116_v51  ;;  %v3973_v61 = vpack.c.bf16 %v150_v55, %v118_v53  ;;  %v182_v2 = vld [vmem:[#allocation5 + $0x2f0] sm:$0xff] }
  0x86   :  { %3930 = vmatpush1.bf16.msra.mxu1 %v3929_v63  ;;  %3932 = vmatprep.subr.bf16.mxu0 %v3931_v1  ;;  %v215_v59 = vld [vmem:[#allocation5 + $0x3f8] sm:$0xff]  ;;  %v3967_v62 = vpack.c.bf16 %v213_v57, %v181_v56  ;;  %v180_v63 = vld [vmem:[#allocation5 + $0x2e0] sm:$0xff]  ;;  %v214_v4 = vld [vmem:[#allocation5 + $0x3f0] sm:$0xff] }
  0x87   :  { %3940 = vmatprep.subr.bf16.mxu1 %v3939_v5  ;;  %v212_v1 = vld [vmem:[#allocation5 + $0x3e0] sm:$0xff]  ;;  %v3975_v3 = vpack.c.bf16 %v215_v59, %v183_v58  ;;  %v1605_v6 = vld [vmem:[#allocation8 + $0x88] sm:$0xff]  ;;  %v3977_v10 = vpack.c.bf16 %v214_v4, %v182_v2  ;;  %v1607_v18 = vld [vmem:[#allocation8 + $0x98] sm:$0xff] }
  0x88   :  { %3282 = vmatmul.mubr.msk.f32.vlgmr.msra.gmra.mrb[8].mxu0 %vm384_vm0, %v4815_v26  ;;  %v1604_v5 = vld [vmem:[#allocation8 + $0x80] sm:$0xff]  ;;  %v1637_v8 = vld [vmem:[#allocation8 + $0x188] sm:$0xff]  ;;  %v3969_v9 = vpack.c.bf16 %v212_v1, %v180_v63  ;;  %v1638_v19 = vld [vmem:[#allocation8 + $0x190] sm:$0xff] }
  0x89   :  { %3283 = vmatmul.mubr.msk.f32.vlgmr.msra.gmra.mrb[8].mxu1 %vm384_vm0, %v4815_v26  ;;  %3934 = vmatpush1.bf16.msra.mxu0 %v3933_v11  ;;  %v1636_v7 = vld [vmem:[#allocation8 + $0x180] sm:$0xff]  ;;  %v3979_v11 = vpack.c.bf16 %v1605_v6, %v1604_v5  ;;  %v1621_v16 = vld [vmem:[#allocation8 + $0x108] sm:$0xff]  ;;  %v1639_v20 = vld [vmem:[#allocation8 + $0x198] sm:$0xff] }
  0x8a   :  { %3942 = vmatpush1.bf16.msra.mxu1 %v3941_v12  ;;  %3936 = vmatprep.subr.bf16.mxu0 %v3935_v13  ;;  %v1588_v12 = vld [vmem:[#allocation8] sm:$0xff]  ;;  %v1589_v13 = vld [vmem:[#allocation8 + $0x8] sm:$0xff]  ;;  %v4011_v15 = vpack.c.bf16 %v1637_v8, %v1636_v7  ;;  %v1622_v27 = vld [vmem:[#allocation8 + $0x110] sm:$0xff]  ;;  %v4015_v28 = vpack.c.bf16 %v1639_v20, %v1638_v19 }
  0x8b   :  { %3944 = vmatprep.subr.bf16.mxu1 %v3943_v17  ;;  %1162 = vmatprep.mubr.f32.mxu0 %v4709_v0  ;;  %v1620_v14 = vld [vmem:[#allocation8 + $0x100] sm:$0xff]  ;;  %v1606_v17 = vld [vmem:[#allocation8 + $0x90] sm:$0xff]  ;;  %v3981_v21 = vpack.c.bf16 %v1589_v13, %v1588_v12  ;;  %v1623_v29 = vld [vmem:[#allocation8 + $0x118] sm:$0xff] }
  0x8c   :  { %1233 = vmatprep.mubr.f32.mxu1 %v4709_v0  ;;  %v4013_v22 = vpack.c.bf16 %v1621_v16, %v1620_v14  ;;  %v1609_v31 = vld [vmem:[#allocation8 + $0xa8] sm:$0xff]  ;;  %v4017_v34 = vpack.c.bf16 %v1623_v29, %v1622_v27  ;;  %v1610_v41 = vld [vmem:[#allocation8 + $0xb0] sm:$0xff]  ;;  %v1643_v44 = vld [vmem:[#allocation8 + $0x1b8] sm:$0xff] }
  0x8d   :  { %3938 = vmatpush1.bf16.msra.mxu0 %v3937_v23  ;;  %v3983_v23 = vpack.c.bf16 %v1607_v18, %v1606_v17  ;;  %v1641_v32 = vld [vmem:[#allocation8 + $0x1a8] sm:$0xff]  ;;  %v1642_v43 = vld [vmem:[#allocation8 + $0x1b0] sm:$0xff]  ;;  %v1627_v51 = vld [vmem:[#allocation8 + $0x138] sm:$0xff] }
  0x8e   :  { %3946 = vmatpush1.bf16.msra.mxu1 %v3945_v24  ;;  %3948 = vmatprep.subr.bf16.mxu0 %v3947_v25  ;;  %v1590_v24 = vld [vmem:[#allocation8 + $0x10] sm:$0xff]  ;;  %v1591_v25 = vld [vmem:[#allocation8 + $0x18] sm:$0xff]  ;;  %v1625_v40 = vld [vmem:[#allocation8 + $0x128] sm:$0xff] }
  0x8f   :  { %3956 = vmatprep.subr.bf16.mxu1 %v3955_v30  ;;  %v1608_v30 = vld [vmem:[#allocation8 + $0xa0] sm:$0xff]  ;;  %v3985_v33 = vpack.c.bf16 %v1591_v25, %v1590_v24  ;;  %v1594_v47 = vld [vmem:[#allocation8 + $0x30] sm:$0xff]  ;;  %v1613_v53 = vld [vmem:[#allocation8 + $0xc8] sm:$0xff] }
  0x90   :  { %3284 = vmatmul.mubr.msk.f32.vlgmr.msra.gmra.mrb[10].mxu0 %vm384_vm0, %v4815_v26  ;;  %v3987_v35 = vpack.c.bf16 %v1609_v31, %v1608_v30  ;;  %v1612_v52 = vld [vmem:[#allocation8 + $0xc0] sm:$0xff]  ;;  %v1645_v55 = vld [vmem:[#allocation8 + $0x1c8] sm:$0xff]  ;;  %v1614_v1 = vld [vmem:[#allocation8 + $0xd0] sm:$0xff] }
  0x91   :  { %3285 = vmatmul.mubr.msk.f32.vlgmr.msra.gmra.mrb[10].mxu1 %vm384_vm0, %v4815_v26  ;;  %3950 = vmatpush1.bf16.msra.mxu0 %v3949_v36  ;;  %v1592_v36 = vld [vmem:[#allocation8 + $0x20] sm:$0xff]  ;;  %v3995_v58 = vpack.c.bf16 %v1613_v53, %v1612_v52  ;;  %v1629_v63 = vld [vmem:[#allocation8 + $0x148] sm:$0xff]  ;;  %v1615_v2 = vld [vmem:[#allocation8 + $0xd8] sm:$0xff] }
  0x92   :  { %3958 = vmatpush1.bf16.msra.mxu1 %v3957_v37  ;;  %3952 = vmatprep.subr.bf16.mxu0 %v3951_v38  ;;  %v1593_v37 = vld [vmem:[#allocation8 + $0x28] sm:$0xff]  ;;  %v1624_v38 = vld [vmem:[#allocation8 + $0x120] sm:$0xff]  ;;  %v1647_v4 = vld [vmem:[#allocation8 + $0x1d8] sm:$0xff]  ;;  %v3999_v7 = vpack.c.bf16 %v1615_v2, %v1614_v1 }
  0x93   :  { %3960 = vmatprep.subr.bf16.mxu1 %v3959_v42  ;;  %1304 = vmatprep.mubr.f32.mxu0 %v4709_v0  ;;  %v1611_v42 = vld [vmem:[#allocation8 + $0xb8] sm:$0xff]  ;;  %v3989_v45 = vpack.c.bf16 %v1593_v37, %v1592_v36  ;;  %v1596_v59 = vld [vmem:[#allocation8 + $0x40] sm:$0xff]  ;;  %v1598_v8 = vld [vmem:[#allocation8 + $0x50] sm:$0xff] }
  0x94   :  { %1375 = vmatprep.mubr.f32.mxu1 %v4709_v0  ;;  %v3991_v46 = vpack.c.bf16 %v1611_v42, %v1610_v41  ;;  %v1631_v12 = vld [vmem:[#allocation8 + $0x158] sm:$0xff]  ;;  %v1616_v13 = vld [vmem:[#allocation8 + $0xe0] sm:$0xff]  ;;  %v1617_v14 = vld [vmem:[#allocation8 + $0xe8] sm:$0xff] }
  0x95   :  { %3954 = vmatpush1.bf16.msra.mxu0 %v3953_v48  ;;  %v1595_v48 = vld [vmem:[#allocation8 + $0x38] sm:$0xff]  ;;  %v1649_v16 = vld [vmem:[#allocation8 + $0x1e8] sm:$0xff]  ;;  %v4003_v19 = vpack.c.bf16 %v1617_v14, %v1616_v13  ;;  %v1600_v20 = vld [vmem:[#allocation8 + $0x60] sm:$0xff] }
  0x96   :  { %3962 = vmatpush1.bf16.msra.mxu1 %v3961_v49  ;;  %3964 = vmatprep.subr.bf16.mxu0 %v3963_v50  ;;  %v1626_v49 = vld [vmem:[#allocation8 + $0x130] sm:$0xff]  ;;  %v4023_v50 = vpack.c.bf16 %v1643_v44, %v1642_v43  ;;  %v3993_v56 = vpack.c.bf16 %v1595_v48, %v1594_v47  ;;  %v1633_v24 = vld [vmem:[#allocation8 + $0x168] sm:$0xff]  ;;  %v1619_v29 = vld [vmem:[#allocation8 + $0xf8] sm:$0xff] }
  0x97   :  { %3972 = vmatprep.subr.bf16.mxu1 %v3971_v54  ;;  %v1644_v54 = vld [vmem:[#allocation8 + $0x1c0] sm:$0xff]  ;;  %v4025_v57 = vpack.c.bf16 %v1627_v51, %v1626_v49  ;;  %v1650_v30 = vld [vmem:[#allocation8 + $0x1f0] sm:$0xff]  ;;  %v1635_v37 = vld [vmem:[#allocation8 + $0x178] sm:$0xff] }
  0x98   :  { %3286 = vmatmul.mubr.msk.f32.vlgmr.msra.gmra.mrb[12].mxu0 %vm384_vm0, %v4815_v26  ;;  %v1634_v36 = vld [vmem:[#allocation8 + $0x170] sm:$0xff]  ;;  %v1700_v41 = vld [vmem:[#allocation8 + $0x380] sm:$0xff]  ;;  %v1701_v43 = vld [vmem:[#allocation8 + $0x388] sm:$0xff] }
  0x99   :  { %3287 = vmatmul.mubr.msk.f32.vlgmr.msra.gmra.mrb[12].mxu1 %vm384_vm0, %v4815_v26  ;;  %3966 = vmatpush1.bf16.msra.mxu0 %v3965_v60  ;;  %v1597_v60 = vld [vmem:[#allocation8 + $0x48] sm:$0xff]  ;;  %v4075_v44 = vpack.c.bf16 %v1701_v43, %v1700_v41  ;;  %v4865_v47 = vld [vmem:[#allocation7] sm:$0xff] }
  0x9a   :  { %3974 = vmatpush1.bf16.msra.mxu1 %v3973_v61  ;;  %3968 = vmatprep.subr.bf16.mxu0 %v3967_v62  ;;  %v1628_v61 = vld [vmem:[#allocation8 + $0x140] sm:$0xff]  ;;  %v4027_v62 = vpack.c.bf16 %v1645_v55, %v1644_v54  ;;  %v3997_v5 = vpack.c.bf16 %v1597_v60, %v1596_v59  ;;  %v1653_v60 = vld [vmem:[#allocation8 + $0x208] sm:$0xff] }
  0x9b   :  { %3976 = vmatprep.subr.bf16.mxu1 %v3975_v3  ;;  %1446 = vmatprep.mubr.f32.mxu0 %v4709_v0  ;;  %v1646_v3 = vld [vmem:[#allocation8 + $0x1d0] sm:$0xff]  ;;  %v4029_v6 = vpack.c.bf16 %v1629_v63, %v1628_v61  ;;  %v1652_v59 = vld [vmem:[#allocation8 + $0x200] sm:$0xff] }
  0x9c   :  { %1517 = vmatprep.mubr.f32.mxu1 %v4709_v0  ;;  %v1640_v0 = vld [vmem:[#allocation8 + $0x1a0] sm:$0xff] }
  0x9d   :  { %3970 = vmatpush1.bf16.msra.mxu0 %v3969_v9  ;;  %v4019_v39 = vpack.c.bf16 %v1641_v32, %v1640_v0  ;;  %v1599_v9 = vld [vmem:[#allocation8 + $0x58] sm:$0xff]  ;;  %v1602_v32 = vld [vmem:[#allocation8 + $0x70] sm:$0xff]  ;;  %v1684_v61 = vld [vmem:[#allocation8 + $0x300] sm:$0xff] }
  0x9e   :  { %3978 = vmatpush1.bf16.msra.mxu1 %v3977_v10  ;;  %3980 = vmatprep.subr.bf16.mxu0 %v3979_v11  ;;  %v1630_v10 = vld [vmem:[#allocation8 + $0x150] sm:$0xff]  ;;  %v4031_v11 = vpack.c.bf16 %v1647_v4, %v1646_v3  ;;  %v4001_v17 = vpack.c.bf16 %v1599_v9, %v1598_v8  ;;  %v1651_v0 = vld [vmem:[#allocation8 + $0x1f8] sm:$0xff]  ;;  %v1685_v3 = vld [vmem:[#allocation8 + $0x308] sm:$0xff] }
  0x9f   :  { %4012 = vmatprep.subr.bf16.mxu1 %v4011_v15  ;;  %v1648_v15 = vld [vmem:[#allocation8 + $0x1e0] sm:$0xff]  ;;  %v4033_v18 = vpack.c.bf16 %v1631_v12, %v1630_v10  ;;  %v1670_v4 = vld [vmem:[#allocation8 + $0x290] sm:$0xff] }
  0xa0   :  { %3288 = vmatmul.mubr.msk.f32.vlgmr.msra.gmra.mrb[14].mxu0 %vm384_vm0, %v4815_v26  ;;  %v1702_v10 = vld [vmem:[#allocation8 + $0x390] sm:$0xff] }
  0xa1   :  { %3289 = vmatmul.mubr.msk.f32.vlgmr.msra.gmra.mrb[14].mxu1 %vm384_vm0, %v4815_v26  ;;  %3982 = vmatpush3.bf16.msra.mxu0 %v3981_v21  ;;  %v4021_v26 = vpack.c.bf16 %v1625_v40, %v1624_v38  ;;  %v1601_v21 = vld [vmem:[#allocation8 + $0x68] sm:$0xff]  ;;  %v4041_v38 = vpack.c.bf16 %v1635_v37, %v1634_v36 }
  0xa2   :  { %4014 = vmatpush3.bf16.msra.mxu1 %v4013_v22  ;;  %3984 = vmatprep.subr.bf16.mxu0 %v3983_v23  ;;  %v4035_v22 = vpack.c.bf16 %v1649_v16, %v1648_v15  ;;  %v1632_v23 = vld [vmem:[#allocation8 + $0x160] sm:$0xff]  ;;  %v4005_v25 = vpack.c.bf16 %v1601_v21, %v1600_v20  ;;  %v1669_v40 = vld [vmem:[#allocation8 + $0x288] sm:$0xff]  ;;  %v4045_v15 = vpack.c.bf16 %v1653_v60, %v1652_v59  ;;  %v1655_v20 = vld [vmem:[#allocation8 + $0x218] sm:$0xff] }
  0xa3   :  { %4016 = vmatprep.subr.bf16.mxu1 %v4015_v28  ;;  %v4037_v27 = vpack.c.bf16 %v1633_v24, %v1632_v23  ;;  %v1618_v28 = vld [vmem:[#allocation8 + $0xf0] sm:$0xff]  ;;  %v1687_v24 = vld [vmem:[#allocation8 + $0x318] sm:$0xff]  ;;  %v1657_v37 = vld [vmem:[#allocation8 + $0x228] sm:$0xff] }
  0xa4   :  { %v4007_v31 = vpack.c.bf16 %v1619_v29, %v1618_v28  ;;  %v1686_v21 = vld [vmem:[#allocation8 + $0x310] sm:$0xff] }
  0xa5   :  { %3986 = vmatpush3.bf16.msra.mxu0 %v3985_v33  ;;  %v1603_v33 = vld [vmem:[#allocation8 + $0x78] sm:$0xff] }
  0xa6   :  { %4018 = vmatpush3.bf16.msra.mxu1 %v4017_v34  ;;  %3988 = vmatprep.subr.bf16.mxu0 %v3987_v35  ;;  %v4039_v34 = vpack.c.bf16 %v1651_v0, %v1650_v30  ;;  %v4009_v35 = vpack.c.bf16 %v1603_v33, %v1602_v32  ;;  %v1704_v30 = vld [vmem:[#allocation8 + $0x3a0] sm:$0xff] }
  0xa7   :  { %4020 = vmatprep.subr.bf16.mxu1 %v4019_v39  ;;  %v1668_v39 = vld [vmem:[#allocation8 + $0x280] sm:$0xff] }
  0xa8   :  { %v4043_v42 = vpack.c.bf16 %v1669_v40, %v1668_v39  ;;  %v1656_v33 = vld [vmem:[#allocation8 + $0x220] sm:$0xff]  ;;  %v1689_v39 = vld [vmem:[#allocation8 + $0x328] sm:$0xff] }
  0xa9   :  { %3990 = vmatpush3.bf16.msra.mxu0 %v3989_v45  ;;  %v224_v45 = vlaneseq }
  0xaa   :  { %4022 = vmatpush3.bf16.msra.mxu1 %v4021_v26  ;;  %3992 = vmatprep.subr.bf16.mxu0 %v3991_v46 }
  0xab   :  { %4024 = vmatprep.subr.bf16.mxu1 %v4023_v50  ;;  %v225_v26 = vshrl.u32 %v224_v45, 7  ;;  %v1675_v45 = vld [vmem:[#allocation8 + $0x2b8] sm:$0xff] }
  0xad   :  { %3994 = vmatpush3.bf16.msra.mxu0 %v3993_v56  ;;  %v4863_v46 = vsub.s32 0, %v225_v26  ;;  %v4867_v48 = vsub.s32 2, %v225_v26  ;;  %v4869_v49 = vsub.s32 1, %v225_v26  ;;  %v4871_v50 = vsub.s32 3, %v225_v26 }
  0xae   :  { %4026 = vmatpush3.bf16.msra.mxu1 %v4025_v57  ;;  %3996 = vmatprep.subr.bf16.mxu0 %v3995_v58  ;;  %v4887_v12 = vsub.s32 7, %v225_v26 }
  0xaf   :  { %4028 = vmatprep.subr.bf16.mxu1 %v4027_v62  ;;  %v227_v51 = vrot.slane %v4865_v47, %v4863_v46  ;;  %v235_v52 = vrot.slane %v4865_v47, %v4867_v48  ;;  %v231_v53 = vrot.slane %v4865_v47, %v4869_v49  ;;  %v239_v54 = vrot.slane %v4865_v47, %v4871_v50 }
  0xb0   :  { %v4881_v62 = vsub.s32 4, %v225_v26  ;;  %v255_v0 = vrot.slane %v4865_v47, %v4887_v12 }
  0xb1   :  { %3998 = vmatpush3.bf16.msra.mxu0 %v3997_v5  ;;  %v1671_v5 = vld [vmem:[#allocation8 + $0x298] sm:$0xff] }
  0xb2   :  { %4030 = vmatpush3.bf16.msra.mxu1 %v4029_v6  ;;  %4000 = vmatprep.subr.bf16.mxu0 %v3999_v7  ;;  %v4883_v6 = vsub.s32 6, %v225_v26  ;;  %v4885_v7 = vsub.s32 5, %v225_v26 }
  0xb3   :  { %4032 = vmatprep.subr.bf16.mxu1 %v4031_v11  ;;  %v1703_v11 = vld [vmem:[#allocation8 + $0x398] sm:$0xff] }
  0xb4   :  { %v4079_v23 = vpack.c.bf16 %v1703_v11, %v1702_v10  ;;  %v251_v28 = vrot.slane %v4865_v47, %v4883_v6  ;;  %v247_v29 = vrot.slane %v4865_v47, %v4885_v7  ;;  %v1677_v10 = vld [vmem:[#allocation8 + $0x2c8] sm:$0xff] }
  0xb5   :  { %4002 = vmatpush3.bf16.msra.mxu0 %v4001_v17  ;;  %v4077_v17 = vpack.c.bf16 %v1685_v3, %v1684_v61 }
  0xb6   :  { %4034 = vmatpush3.bf16.msra.mxu1 %v4033_v18  ;;  %4004 = vmatprep.subr.bf16.mxu0 %v4003_v19  ;;  %v4047_v18 = vpack.c.bf16 %v1671_v5, %v1670_v4  ;;  %v1654_v19 = vld [vmem:[#allocation8 + $0x210] sm:$0xff] }
  0xb7   :  { %4036 = vmatprep.subr.bf16.mxu1 %v4035_v22  ;;  %v243_v22 = vrot.slane %v4865_v47, %v4881_v62  ;;  %v4049_v32 = vpack.c.bf16 %v1655_v20, %v1654_v19 }
  0xb9   :  { %4006 = vmatpush3.bf16.msra.mxu0 %v4005_v25  ;;  %v1672_v25 = vld [vmem:[#allocation8 + $0x2a0] sm:$0xff] }
  0xba   :  { %4038 = vmatpush3.bf16.msra.mxu1 %v4037_v27  ;;  %4008 = vmatprep.subr.bf16.mxu0 %v4007_v31  ;;  %v1673_v27 = vld [vmem:[#allocation8 + $0x2a8] sm:$0xff] }
  0xbb   :  { %4040 = vmatprep.subr.bf16.mxu1 %v4039_v34  ;;  %v1705_v31 = vld [vmem:[#allocation8 + $0x3a8] sm:$0xff]  ;;  %v4051_v36 = vpack.c.bf16 %v1673_v27, %v1672_v25 }
  0xbc   :  { %v4083_v43 = vpack.c.bf16 %v1705_v31, %v1704_v30  ;;  %v1678_v30 = vld [vmem:[#allocation8 + $0x2d0] sm:$0xff]  ;;  %v1679_v31 = vld [vmem:[#allocation8 + $0x2d8] sm:$0xff] }
  0xbd   :  { %4010 = vmatpush3.bf16.msra.mxu0 %v4009_v35  ;;  %v4081_v35 = vpack.c.bf16 %v1687_v24, %v1686_v21  ;;  %v1660_v21 = vld [vmem:[#allocation8 + $0x240] sm:$0xff] }
  0xbe   :  { %4042 = vmatpush3.bf16.msra.mxu1 %v4041_v38  ;;  %4044 = vmatprep.subr.bf16.mxu0 %v4043_v42  ;;  %v1688_v38 = vld [vmem:[#allocation8 + $0x320] sm:$0xff] }
  0xbf   :  { %4076 = vmatprep.subr.bf16.mxu1 %v4075_v44  ;;  %v1674_v44 = vld [vmem:[#allocation8 + $0x2b0] sm:$0xff]  ;;  %v4085_v60 = vpack.c.bf16 %v1689_v39, %v1688_v38 }
  0xc0   :  { %v4055_v61 = vpack.c.bf16 %v1675_v45, %v1674_v44  ;;  %v1662_v44 = vld [vmem:[#allocation8 + $0x250] sm:$0xff]  ;;  %v1663_v45 = vld [vmem:[#allocation8 + $0x258] sm:$0xff] }
 0x13b   :  { %v454_v55 = vpop.f32.mrb[0].mxu0 }
 0x13c   :  { %v455_v56 = vadd.f32 %v454_v55, %v227_v51  ;;  %v525_v57 = vpop.f32.mrb[0].mxu1  ;;  %v456_v58 = vpop.f32.mrb[1].mxu0 }
 0x13d   :  { %v526_v63 = vadd.f32 %v525_v57, %v235_v52  ;;  %v457_v1 = vadd.f32 %v456_v58, %v231_v53  ;;  %v527_v2 = vpop.f32.mrb[1].mxu1  ;;  %v4901_v52 = vld [vmem:[#allocation7 + $0x8] sm:$0xff]  ;;  %v1706_v53 = vld [vmem:[#allocation8 + $0x3b0] sm:$0xff]  ;;  %v4053_v57 = vpack.c.bf16 %v1657_v37, %v1656_v33 }
 0x13e   :  { %v1524_v8 = vmax.f32 %v455_v56, 0.0  ;;  %v528_v9 = vadd.f32 %v527_v2, %v239_v54  ;;  %v1707_v54 = vld [vmem:[#allocation8 + $0x3b8] sm:$0xff]  ;;  %v1690_v2 = vld [vmem:[#allocation8 + $0x330] sm:$0xff]  ;;  %v259_v4 = vrot.slane %v4901_v52, %v4863_v46  ;;  %v267_v11 = vrot.slane %v4901_v52, %v4867_v48 }
 0x13f   :  { %v1526_v13 = vmax.f32 %v526_v63, 0.0  ;;  %v1525_v14 = vmax.f32 %v457_v1, 0.0  ;;  %v1658_v63 = vld [vmem:[#allocation8 + $0x230] sm:$0xff]  ;;  %v1659_v1 = vld [vmem:[#allocation8 + $0x238] sm:$0xff]  ;;  %v4087_v5 = vpack.c.bf16 %v1707_v54, %v1706_v53  ;;  %v275_v53 = vrot.slane %v4901_v52, %v4881_v62 }
 0x140   :  { %1556 = vst [vmem:[#allocation11] sm:$0xff] %v1524_v8  ;;  %v1527_v16 = vmax.f32 %v528_v9, 0.0  ;;  %v1676_v9 = vld [vmem:[#allocation8 + $0x2c0] sm:$0xff] }
 0x141   :  { %1558 = vst [vmem:[#allocation11 + $0x10] sm:$0xff] %v1526_v13  ;;  %1557 = vst [vmem:[#allocation11 + $0x8] sm:$0xff] %v1525_v14  ;;  %2171 = vmatprep.mubr.f32.mxu0 %v1525_v14  ;;  %v1708_v14 = vld [vmem:[#allocation8 + $0x3c0] sm:$0xff]  ;;  %v4059_v20 = vpack.c.bf16 %v1677_v10, %v1676_v9  ;;  %v1665_v10 = vld [vmem:[#allocation8 + $0x268] sm:$0xff] }
 0x142   :  { %1559 = vst [vmem:[#allocation11 + $0x18] sm:$0xff] %v1527_v16  ;;  %2241 = vmatprep.mubr.f32.mxu1 %v1527_v16  ;;  %2172 = vmatmul.mubr.f32.vlgmr.msra.gmra.mrb[16].mxu0 %v1524_v8  ;;  %v1691_v8 = vld [vmem:[#allocation8 + $0x338] sm:$0xff]  ;;  %v271_v16 = vrot.slane %v4901_v52, %v4871_v50 }
 0x143   :  { %2242 = vmatmul.mubr.f32.vlgmr.msra.gmra.mrb[16].mxu1 %v1526_v13  ;;  %4046 = vmatpush3.bf16.msra.mxu0 %v4045_v15  ;;  %v596_v34 = vpop.f32.mrb[2].mxu0  ;;  %v263_v13 = vrot.slane %v4901_v52, %v4869_v49  ;;  %v1709_v15 = vld [vmem:[#allocation8 + $0x3c8] sm:$0xff]  ;;  %v4089_v19 = vpack.c.bf16 %v1691_v8, %v1690_v2  ;;  %v287_v2 = vrot.slane %v4901_v52, %v4887_v12 }
 0x144   :  { %4078 = vmatpush3.bf16.msra.mxu1 %v4077_v17  ;;  %4048 = vmatprep.subr.bf16.mxu0 %v4047_v18  ;;  %v4897_v40 = vadd.f32 %v596_v34, %v243_v22  ;;  %v667_v41 = vpop.f32.mrb[2].mxu1  ;;  %v598_v42 = vpop.f32.mrb[3].mxu0  ;;  %v4057_v17 = vpack.c.bf16 %v1659_v1, %v1658_v63  ;;  %v1661_v22 = vld [vmem:[#allocation8 + $0x248] sm:$0xff]  ;;  %v1710_v34 = vld [vmem:[#allocation8 + $0x3d0] sm:$0xff]  ;;  %v1712_v63 = vld [vmem:[#allocation8 + $0x3e0] sm:$0xff] }
 0x145   :  { %4080 = vmatprep.subr.bf16.mxu1 %v4079_v23  ;;  %v4899_v26 = vadd.f32 %v667_v41, %v251_v28  ;;  %v599_v47 = vadd.f32 %v598_v42, %v247_v29  ;;  %v669_v51 = vpop.f32.mrb[3].mxu1  ;;  %v1692_v23 = vld [vmem:[#allocation8 + $0x340] sm:$0xff]  ;;  %v4091_v28 = vpack.c.bf16 %v1709_v15, %v1708_v14  ;;  %v1693_v29 = vld [vmem:[#allocation8 + $0x348] sm:$0xff]  ;;  %v4061_v38 = vpack.c.bf16 %v1661_v22, %v1660_v21  ;;  %v4951_v22 = vld [vmem:[#allocation7 + $0x10] sm:$0xff] }
 0x146   :  { %v1528_v55 = vmax.f32 %v4897_v40, 0.0  ;;  %v670_v56 = vadd.f32 %v669_v51, %v255_v0  ;;  %v4093_v42 = vpack.c.bf16 %v1693_v29, %v1692_v23  ;;  %v1713_v1 = vld [vmem:[#allocation8 + $0x3e8] sm:$0xff]  ;;  %v1714_v23 = vld [vmem:[#allocation8 + $0x3f0] sm:$0xff]  ;;  %v1720_v40 = vld [vmem:[#allocation8 + $0x420] sm:$0xff] }
 0x147   :  { %4050 = vmatpush3.bf16.msra.mxu0 %v4049_v32  ;;  %v1530_v58 = vmax.f32 %v4899_v26, 0.0  ;;  %v1529_v59 = vmax.f32 %v599_v47, 0.0  ;;  %v1694_v47 = vld [vmem:[#allocation8 + $0x350] sm:$0xff] }
 0x148   :  { %4082 = vmatpush3.bf16.msra.mxu1 %v4081_v35  ;;  %4052 = vmatprep.subr.bf16.mxu0 %v4051_v36  ;;  %1560 = vst [vmem:[#allocation11 + $0x20] sm:$0xff] %v1528_v55  ;;  %v1531_v3 = vmax.f32 %v670_v56, 0.0  ;;  %v1711_v35 = vld [vmem:[#allocation8 + $0x3d8] sm:$0xff] }
 0x149   :  { %4084 = vmatprep.subr.bf16.mxu1 %v4083_v43  ;;  %1562 = vst [vmem:[#allocation11 + $0x30] sm:$0xff] %v1530_v58  ;;  %1561 = vst [vmem:[#allocation11 + $0x28] sm:$0xff] %v1529_v59  ;;  %2311 = vmatprep.mubr.f32.mxu0 %v1529_v59  ;;  %v4063_v43 = vpack.c.bf16 %v1679_v31, %v1678_v30  ;;  %v4095_v54 = vpack.c.bf16 %v1711_v35, %v1710_v34  ;;  %v1695_v56 = vld [vmem:[#allocation8 + $0x358] sm:$0xff]  ;;  %v1681_v59 = vld [vmem:[#allocation8 + $0x2e8] sm:$0xff] }
 0x14a   :  { %1563 = vst [vmem:[#allocation11 + $0x38] sm:$0xff] %v1531_v3  ;;  %2381 = vmatprep.mubr.f32.mxu1 %v1531_v3  ;;  %v4065_v3 = vpack.c.bf16 %v1663_v45, %v1662_v44  ;;  %v4097_v8 = vpack.c.bf16 %v1695_v56, %v1694_v47  ;;  %v1666_v35 = vld [vmem:[#allocation8 + $0x270] sm:$0xff]  ;;  %v291_v44 = vrot.slane %v4951_v22, %v4863_v46  ;;  %v1699_v47 = vld [vmem:[#allocation8 + $0x378] sm:$0xff] }
 0x14b   :  { %4054 = vmatpush3.bf16.msra.mxu0 %v4053_v57  ;;  %v738_v18 = vpop.f32.mrb[4].mxu0  ;;  %v1680_v57 = vld [vmem:[#allocation8 + $0x2e0] sm:$0xff]  ;;  %v299_v56 = vrot.slane %v4951_v22, %v4867_v48 }
 0x14c   :  { %4086 = vmatpush3.bf16.msra.mxu1 %v4085_v60  ;;  %4056 = vmatprep.subr.bf16.mxu0 %v4055_v61  ;;  %v4917_v24 = vadd.f32 %v738_v18, %v259_v4  ;;  %v809_v25 = vpop.f32.mrb[4].mxu1  ;;  %v740_v27 = vpop.f32.mrb[5].mxu0  ;;  %v283_v60 = vrot.slane %v4901_v52, %v4883_v6  ;;  %v279_v61 = vrot.slane %v4901_v52, %v4885_v7  ;;  %v1664_v4 = vld [vmem:[#allocation8 + $0x260] sm:$0xff]  ;;  %v1682_v18 = vld [vmem:[#allocation8 + $0x2f0] sm:$0xff] }
 0x14d   :  { %4088 = vmatprep.subr.bf16.mxu1 %v4087_v5  ;;  %v4919_v0 = vadd.f32 %v809_v25, %v267_v11  ;;  %v4921_v32 = vadd.f32 %v740_v27, %v263_v13  ;;  %v811_v33 = vpop.f32.mrb[5].mxu1  ;;  %v4067_v9 = vpack.c.bf16 %v1681_v59, %v1680_v57  ;;  %v1696_v11 = vld [vmem:[#allocation8 + $0x360] sm:$0xff]  ;;  %v1697_v13 = vld [vmem:[#allocation8 + $0x368] sm:$0xff]  ;;  %v1715_v25 = vld [vmem:[#allocation8 + $0x3f8] sm:$0xff]  ;;  %v4069_v29 = vpack.c.bf16 %v1665_v10, %v1664_v4 }
 0x14e   :  { %v1532_v36 = vmax.f32 %v4917_v24, 0.0  ;;  %v4924_v37 = vadd.f32 %v811_v33, %v271_v16  ;;  %v4101_v33 = vpack.c.bf16 %v1697_v13, %v1696_v11  ;;  %v4103_v45 = vpack.c.bf16 %v1715_v25, %v1714_v23  ;;  %v1764_v59 = vld [vmem:[#allocation8 + $0x580] sm:$0xff]  ;;  %v1766_v23 = vld [vmem:[#allocation8 + $0x590] sm:$0xff]  ;;  %v1767_v25 = vld [vmem:[#allocation8 + $0x598] sm:$0xff] }
 0x14f   :  { %4058 = vmatpush3.bf16.msra.mxu0 %v4057_v17  ;;  %v1534_v39 = vmax.f32 %v4919_v0, 0.0  ;;  %v1533_v41 = vmax.f32 %v4921_v32, 0.0  ;;  %v4099_v17 = vpack.c.bf16 %v1713_v1, %v1712_v63  ;;  %v295_v57 = vrot.slane %v4951_v22, %v4869_v49  ;;  %v1716_v4 = vld [vmem:[#allocation8 + $0x400] sm:$0xff]  ;;  %v1803_v24 = vld [vmem:[#allocation8 + $0x6b8] sm:$0xff] }
 0x150   :  { %4090 = vmatpush3.bf16.msra.mxu1 %v4089_v19  ;;  %4060 = vmatprep.subr.bf16.mxu0 %v4059_v20  ;;  %1564 = vst [vmem:[#allocation11 + $0x40] sm:$0xff] %v1532_v36  ;;  %v1535_v51 = vmax.f32 %v4924_v37, 0.0  ;;  %v1683_v19 = vld [vmem:[#allocation8 + $0x2f8] sm:$0xff] }
 0x151   :  { %4092 = vmatprep.subr.bf16.mxu1 %v4091_v28  ;;  %1566 = vst [vmem:[#allocation11 + $0x50] sm:$0xff] %v1534_v39  ;;  %1565 = vst [vmem:[#allocation11 + $0x48] sm:$0xff] %v1533_v41  ;;  %v4071_v34 = vpack.c.bf16 %v1683_v19, %v1682_v18  ;;  %v1835_v0 = vld [vmem:[#allocation8 + $0x7b8] sm:$0xff] }
 0x152   :  { %1567 = vst [vmem:[#allocation11 + $0x58] sm:$0xff] %v1535_v51 }
 0x153   :  { %4062 = vmatpush3.bf16.msra.mxu0 %v4061_v38  ;;  %v880_v5 = vpop.f32.mrb[6].mxu0  ;;  %v1667_v38 = vld [vmem:[#allocation8 + $0x278] sm:$0xff] }
 0x154   :  { %4094 = vmatpush3.bf16.msra.mxu1 %v4093_v42  ;;  %4064 = vmatprep.subr.bf16.mxu0 %v4063_v43  ;;  %v4945_v14 = vadd.f32 %v880_v5, %v275_v53  ;;  %v951_v15 = vpop.f32.mrb[6].mxu1  ;;  %v882_v16 = vpop.f32.mrb[7].mxu0  ;;  %v1698_v42 = vld [vmem:[#allocation8 + $0x370] sm:$0xff]  ;;  %v1732_v53 = vld [vmem:[#allocation8 + $0x480] sm:$0xff]  ;;  %v4073_v63 = vpack.c.bf16 %v1667_v38, %v1666_v35  ;;  %v1717_v5 = vld [vmem:[#allocation8 + $0x408] sm:$0xff] }
 0x155   :  { %4096 = vmatprep.subr.bf16.mxu1 %v4095_v54  ;;  %v4947_v52 = vadd.f32 %v951_v15, %v283_v60  ;;  %v4949_v20 = vadd.f32 %v882_v16, %v279_v61  ;;  %v953_v21 = vpop.f32.mrb[7].mxu1  ;;  %v1733_v54 = vld [vmem:[#allocation8 + $0x488] sm:$0xff]  ;;  %v303_v61 = vrot.slane %v4951_v22, %v4871_v50  ;;  %v1734_v16 = vld [vmem:[#allocation8 + $0x490] sm:$0xff] }
 0x156   :  { %v1536_v27 = vmax.f32 %v4945_v14, 0.0  ;;  %v4954_v28 = vadd.f32 %v953_v21, %v287_v2  ;;  %v1765_v60 = vld [vmem:[#allocation8 + $0x588] sm:$0xff]  ;;  %v4105_v2 = vpack.c.bf16 %v1699_v47, %v1698_v42  ;;  %v1719_v47 = vld [vmem:[#allocation8 + $0x418] sm:$0xff] }
 0x157   :  { %4066 = vmatpush3.bf16.msra.mxu0 %v4065_v3  ;;  %v1538_v30 = vmax.f32 %v4947_v52, 0.0  ;;  %v1537_v31 = vmax.f32 %v4949_v20, 0.0  ;;  %v4107_v3 = vpack.c.bf16 %v1733_v54, %v1732_v53  ;;  %v4139_v13 = vpack.c.bf16 %v1765_v60, %v1764_v59  ;;  %v1749_v15 = vld [vmem:[#allocation8 + $0x508] sm:$0xff]  ;;  %v1750_v53 = vld [vmem:[#allocation8 + $0x510] sm:$0xff]  ;;  %v1751_v59 = vld [vmem:[#allocation8 + $0x518] sm:$0xff] }
 0x158   :  { %4098 = vmatpush3.bf16.msra.mxu1 %v4097_v8  ;;  %4068 = vmatprep.subr.bf16.mxu0 %v4067_v9  ;;  %1568 = vst [vmem:[#allocation11 + $0x60] sm:$0xff] %v1536_v27  ;;  %v1539_v43 = vmax.f32 %v4954_v28, 0.0  ;;  %v1748_v8 = vld [vmem:[#allocation8 + $0x500] sm:$0xff]  ;;  %v1805_v20 = vld [vmem:[#allocation8 + $0x6c8] sm:$0xff]  ;;  %v1867_v14 = vld [vmem:[#allocation8 + $0x8b8] sm:$0xff] }
 0x159   :  { %4100 = vmatprep.subr.bf16.mxu1 %v4099_v17  ;;  %1570 = vst [vmem:[#allocation11 + $0x70] sm:$0xff] %v1538_v30  ;;  %1569 = vst [vmem:[#allocation11 + $0x68] sm:$0xff] %v1537_v31  ;;  %v1735_v17 = vld [vmem:[#allocation8 + $0x498] sm:$0xff]  ;;  %v4141_v42 = vpack.c.bf16 %v1749_v15, %v1748_v8  ;;  %v1736_v60 = vld [vmem:[#allocation8 + $0x4a0] sm:$0xff] }
 0x15a   :  { %1571 = vst [vmem:[#allocation11 + $0x78] sm:$0xff] %v1539_v43  ;;  %v1899_v52 = vld [vmem:[#allocation8 + $0x9b8] sm:$0xff] }
 0x15b   :  { %4070 = vmatpush3.bf16.msra.mxu0 %v4069_v29  ;;  %v1022_v1 = vpop.f32.mrb[8].mxu0 }
 0x15c   :  { %4102 = vmatpush3.bf16.msra.mxu1 %v4101_v33  ;;  %4072 = vmatprep.subr.bf16.mxu0 %v4071_v34  ;;  %v4975_v9 = vadd.f32 %v1022_v1, %v291_v44  ;;  %v1093_v10 = vpop.f32.mrb[8].mxu1  ;;  %v1024_v11 = vpop.f32.mrb[9].mxu0  ;;  %v4109_v34 = vpack.c.bf16 %v1717_v5, %v1716_v4  ;;  %v4111_v44 = vpack.c.bf16 %v1735_v17, %v1734_v16 }
 0x15d   :  { %4104 = vmatprep.subr.bf16.mxu1 %v4103_v45  ;;  %v4977_v18 = vadd.f32 %v1093_v10, %v299_v56  ;;  %v4979_v19 = vadd.f32 %v1024_v11, %v295_v57  ;;  %v1095_v21 = vpop.f32.mrb[9].mxu1  ;;  %v1718_v45 = vld [vmem:[#allocation8 + $0x410] sm:$0xff]  ;;  %v307_v56 = vrot.slane %v4951_v22, %v4881_v62  ;;  %v4143_v57 = vpack.c.bf16 %v1767_v25, %v1766_v23  ;;  %v1753_v23 = vld [vmem:[#allocation8 + $0x528] sm:$0xff]  ;;  %v1739_v25 = vld [vmem:[#allocation8 + $0x4b8] sm:$0xff] }
 0x15e   :  { %v1540_v29 = vmax.f32 %v4975_v9, 0.0  ;;  %v4982_v33 = vadd.f32 %v1095_v21, %v303_v61  ;;  %v1737_v61 = vld [vmem:[#allocation8 + $0x4a8] sm:$0xff]  ;;  %v311_v1 = vrot.slane %v4951_v22, %v4885_v7  ;;  %v319_v4 = vrot.slane %v4951_v22, %v4887_v12  ;;  %v1931_v9 = vld [vmem:[#allocation8 + $0xab8] sm:$0xff] }
 0x15f   :  { %4074 = vmatpush3.bf16.msra.mxu0 %v4073_v63  ;;  %v1542_v35 = vmax.f32 %v4977_v18, 0.0  ;;  %v1541_v38 = vmax.f32 %v4979_v19, 0.0  ;;  %v315_v63 = vrot.slane %v4951_v22, %v4883_v6  ;;  %v4113_v5 = vpack.c.bf16 %v1719_v47, %v1718_v45  ;;  %v1738_v22 = vld [vmem:[#allocation8 + $0x4b0] sm:$0xff]  ;;  %v1869_v19 = vld [vmem:[#allocation8 + $0x8c8] sm:$0xff]  ;;  %v1963_v18 = vld [vmem:[#allocation8 + $0xbb8] sm:$0xff] }
 0x160   :  { %4106 = vmatpush3.bf16.msra.mxu1 %v4105_v2  ;;  %4108 = vmatprep.subr.bf16.mxu0 %v4107_v3  ;;  %1572 = vst [vmem:[#allocation11 + $0x80] sm:$0xff] %v1540_v29  ;;  %v1543_v54 = vmax.f32 %v4982_v33, 0.0  ;;  %v1768_v2 = vld [vmem:[#allocation8 + $0x5a0] sm:$0xff]  ;;  %v1769_v3 = vld [vmem:[#allocation8 + $0x5a8] sm:$0xff]  ;;  %v4145_v10 = vpack.c.bf16 %v1751_v59, %v1750_v53  ;;  %v4115_v11 = vpack.c.bf16 %v1737_v61, %v1736_v60  ;;  %v1722_v59 = vld [vmem:[#allocation8 + $0x430] sm:$0xff] }
 0x161   :  { %4140 = vmatprep.subr.bf16.mxu1 %v4139_v13  ;;  %1574 = vst [vmem:[#allocation11 + $0x90] sm:$0xff] %v1542_v35  ;;  %1573 = vst [vmem:[#allocation11 + $0x88] sm:$0xff] %v1541_v38  ;;  %v1752_v13 = vld [vmem:[#allocation8 + $0x520] sm:$0xff]  ;;  %v4147_v21 = vpack.c.bf16 %v1769_v3, %v1768_v2  ;;  %v1723_v60 = vld [vmem:[#allocation8 + $0x438] sm:$0xff] }
 0x162   :  { %2312 = vmatmul.mubr.f32.vlgmr.msra.gmra.mrb[18].mxu0 %v1528_v55  ;;  %1575 = vst [vmem:[#allocation11 + $0x98] sm:$0xff] %v1543_v54  ;;  %v1721_v55 = vld [vmem:[#allocation8 + $0x428] sm:$0xff]  ;;  %v4149_v32 = vpack.c.bf16 %v1753_v23, %v1752_v13  ;;  %v1754_v61 = vld [vmem:[#allocation8 + $0x530] sm:$0xff]  ;;  %v1772_v3 = vld [vmem:[#allocation8 + $0x5c0] sm:$0xff] }
 0x163   :  { %2382 = vmatmul.mubr.f32.vlgmr.msra.gmra.mrb[18].mxu1 %v1530_v58  ;;  %4110 = vmatpush3.bf16.msra.mxu0 %v4109_v34  ;;  %v1164_v8 = vpop.f32.mrb[10].mxu0  ;;  %v4117_v53 = vpack.c.bf16 %v1721_v55, %v1720_v40  ;;  %v1741_v2 = vld [vmem:[#allocation8 + $0x4c8] sm:$0xff]  ;;  %v1756_v55 = vld [vmem:[#allocation8 + $0x540] sm:$0xff]  ;;  %v5021_v13 = vld [vmem:[#allocation7 + $0x18] sm:$0xff] }
 0x164   :  { %4142 = vmatpush3.bf16.msra.mxu1 %v4141_v42  ;;  %4112 = vmatprep.subr.bf16.mxu0 %v4111_v44  ;;  %v1165_v15 = vadd.f32 %v1164_v8, %v307_v56  ;;  %v1235_v16 = vpop.f32.mrb[10].mxu1  ;;  %v1166_v17 = vpop.f32.mrb[11].mxu0  ;;  %v1770_v42 = vld [vmem:[#allocation8 + $0x5b0] sm:$0xff]  ;;  %v1771_v44 = vld [vmem:[#allocation8 + $0x5b8] sm:$0xff]  ;;  %v1724_v8 = vld [vmem:[#allocation8 + $0x440] sm:$0xff] }
 0x165   :  { %4144 = vmatprep.subr.bf16.mxu1 %v4143_v57  ;;  %2451 = vmatprep.mubr.f32.mxu0 %v1533_v41  ;;  %v1236_v26 = vadd.f32 %v1235_v16, %v315_v63  ;;  %v5009_v58 = vadd.f32 %v1166_v17, %v311_v1  ;;  %v1237_v34 = vpop.f32.mrb[11].mxu1  ;;  %v4119_v41 = vpack.c.bf16 %v1739_v25, %v1738_v22  ;;  %v1740_v1 = vld [vmem:[#allocation8 + $0x4c0] sm:$0xff]  ;;  %v1725_v40 = vld [vmem:[#allocation8 + $0x448] sm:$0xff]  ;;  %v1743_v23 = vld [vmem:[#allocation8 + $0x4d8] sm:$0xff] }
 0x166   :  { %2521 = vmatprep.mubr.f32.mxu1 %v1535_v51  ;;  %v1544_v45 = vmax.f32 %v1165_v15, 0.0  ;;  %v5013_v47 = vadd.f32 %v1237_v34, %v319_v4  ;;  %v4151_v37 = vpack.c.bf16 %v1771_v44, %v1770_v42  ;;  %v1755_v51 = vld [vmem:[#allocation8 + $0x538] sm:$0xff]  ;;  %v1773_v4 = vld [vmem:[#allocation8 + $0x5c8] sm:$0xff]  ;;  %v323_v22 = vrot.slane %v5021_v13, %v4863_v46  ;;  %v1774_v44 = vld [vmem:[#allocation8 + $0x5d0] sm:$0xff] }
 0x167   :  { %4114 = vmatpush3.bf16.msra.mxu0 %v4113_v5  ;;  %v1546_v56 = vmax.f32 %v1236_v26, 0.0  ;;  %v1545_v57 = vmax.f32 %v5009_v58, 0.0  ;;  %v4121_v5 = vpack.c.bf16 %v1723_v60, %v1722_v59  ;;  %v4155_v16 = vpack.c.bf16 %v1773_v4, %v1772_v3  ;;  %v1757_v17 = vld [vmem:[#allocation8 + $0x548] sm:$0xff] }
 0x168   :  { %4146 = vmatpush3.bf16.msra.mxu1 %v4145_v10  ;;  %4116 = vmatprep.subr.bf16.mxu0 %v4115_v11  ;;  %1576 = vst [vmem:[#allocation11 + $0xa0] sm:$0xff] %v1544_v45  ;;  %v1547_v63 = vmax.f32 %v5013_v47, 0.0  ;;  %v4153_v10 = vpack.c.bf16 %v1755_v51, %v1754_v61  ;;  %v4123_v11 = vpack.c.bf16 %v1741_v2, %v1740_v1  ;;  %v1775_v45 = vld [vmem:[#allocation8 + $0x5d8] sm:$0xff]  ;;  %v1744_v2 = vld [vmem:[#allocation8 + $0x4e0] sm:$0xff]  ;;  %v1745_v3 = vld [vmem:[#allocation8 + $0x4e8] sm:$0xff] }
 0x169   :  { %4148 = vmatprep.subr.bf16.mxu1 %v4147_v21  ;;  %1578 = vst [vmem:[#allocation11 + $0xb0] sm:$0xff] %v1546_v56  ;;  %1577 = vst [vmem:[#allocation11 + $0xa8] sm:$0xff] %v1545_v57  ;;  %v1742_v21 = vld [vmem:[#allocation8 + $0x4d0] sm:$0xff]  ;;  %v327_v25 = vrot.slane %v5021_v13, %v4869_v49  ;;  %v331_v34 = vrot.slane %v5021_v13, %v4867_v48  ;;  %v4157_v46 = vpack.c.bf16 %v1757_v17, %v1756_v55  ;;  %v1727_v61 = vld [vmem:[#allocation8 + $0x458] sm:$0xff] }
 0x16a   :  { %1579 = vst [vmem:[#allocation11 + $0xb8] sm:$0xff] %v1547_v63  ;;  %v1726_v56 = vld [vmem:[#allocation8 + $0x450] sm:$0xff]  ;;  %v4127_v60 = vpack.c.bf16 %v1743_v23, %v1742_v21  ;;  %v335_v48 = vrot.slane %v5021_v13, %v4871_v50  ;;  %v4159_v1 = vpack.c.bf16 %v1775_v45, %v1774_v44  ;;  %v1728_v17 = vld [vmem:[#allocation8 + $0x460] sm:$0xff]  ;;  %v4131_v50 = vpack.c.bf16 %v1745_v3, %v1744_v2  ;;  %v1761_v23 = vld [vmem:[#allocation8 + $0x568] sm:$0xff] }
 0x16b   :  { %4118 = vmatpush3.bf16.msra.mxu0 %v4117_v53  ;;  %v1306_v15 = vpop.f32.mrb[12].mxu0  ;;  %v4125_v53 = vpack.c.bf16 %v1725_v40, %v1724_v8  ;;  %v1758_v49 = vld [vmem:[#allocation8 + $0x550] sm:$0xff]  ;;  %v1776_v40 = vld [vmem:[#allocation8 + $0x5e0] sm:$0xff]  ;;  %v4129_v55 = vpack.c.bf16 %v1727_v61, %v1726_v56  ;;  %v1747_v45 = vld [vmem:[#allocation8 + $0x4f8] sm:$0xff]  ;;  %v347_v56 = vrot.slane %v5021_v13, %v4883_v6  ;;  %v351_v3 = vrot.slane %v5021_v13, %v4887_v12 }
 0x16c   :  { %4150 = vmatpush3.bf16.msra.mxu1 %v4149_v32  ;;  %4120 = vmatprep.subr.bf16.mxu0 %v4119_v41  ;;  %v1308_v26 = vpop.f32.mrb[13].mxu0  ;;  %v1377_v42 = vpop.f32.mrb[12].mxu1  ;;  %v1307_v32 = vadd.f32 %v1306_v15, %v323_v22  ;;  %v1760_v21 = vld [vmem:[#allocation8 + $0x560] sm:$0xff]  ;;  %v1746_v44 = vld [vmem:[#allocation8 + $0x4f0] sm:$0xff]  ;;  %v1933_v58 = vld [vmem:[#allocation8 + $0xac8] sm:$0xff] }
 0x16d   :  { %4152 = vmatprep.subr.bf16.mxu1 %v4151_v37  ;;  %v5029_v41 = vadd.f32 %v1308_v26, %v327_v25  ;;  %v1378_v59 = vadd.f32 %v1377_v42, %v331_v34  ;;  %v1759_v37 = vld [vmem:[#allocation8 + $0x558] sm:$0xff]  ;;  %v1379_v51 = vpop.f32.mrb[13].mxu1  ;;  %v339_v25 = vrot.slane %v5021_v13, %v4881_v62  ;;  %v343_v34 = vrot.slane %v5021_v13, %v4885_v7  ;;  %v1780_v12 = vld [vmem:[#allocation8 + $0x600] sm:$0xff]  ;;  %v1781_v13 = vld [vmem:[#allocation8 + $0x608] sm:$0xff] }
 0x16e   :  { %v1548_v4 = vmax.f32 %v1307_v32, 0.0  ;;  %v4161_v15 = vpack.c.bf16 %v1759_v37, %v1758_v49  ;;  %v4165_v49 = vpack.c.bf16 %v1761_v23, %v1760_v21  ;;  %v4135_v37 = vpack.c.bf16 %v1747_v45, %v1746_v44  ;;  %v1829_v21 = vld [vmem:[#allocation8 + $0x788] sm:$0xff]  ;;  %v1798_v45 = vld [vmem:[#allocation8 + $0x690] sm:$0xff] }
 0x16f   :  { %4122 = vmatpush3.bf16.msra.mxu0 %v4121_v5  ;;  %v1549_v5 = vmax.f32 %v5029_v41, 0.0  ;;  %v1550_v8 = vmax.f32 %v1378_v59, 0.0  ;;  %v1778_v59 = vld [vmem:[#allocation8 + $0x5f0] sm:$0xff]  ;;  %v1813_v44 = vld [vmem:[#allocation8 + $0x708] sm:$0xff] }
 0x170   :  { %4154 = vmatpush3.bf16.msra.mxu1 %v4153_v10  ;;  %4124 = vmatprep.subr.bf16.mxu0 %v4123_v11  ;;  %v1777_v10 = vld [vmem:[#allocation8 + $0x5e8] sm:$0xff]  ;;  %v5034_v11 = vadd.f32 %v1379_v51, %v335_v48  ;;  %1580 = vst [vmem:[#allocation11 + $0xc0] sm:$0xff] %v1548_v4  ;;  %v1730_v48 = vld [vmem:[#allocation8 + $0x470] sm:$0xff]  ;;  %v1731_v51 = vld [vmem:[#allocation8 + $0x478] sm:$0xff] }
 0x171   :  { %4156 = vmatprep.subr.bf16.mxu1 %v4155_v16  ;;  %1581 = vst [vmem:[#allocation11 + $0xc8] sm:$0xff] %v1549_v5  ;;  %1582 = vst [vmem:[#allocation11 + $0xd0] sm:$0xff] %v1550_v8  ;;  %v1729_v16 = vld [vmem:[#allocation8 + $0x468] sm:$0xff]  ;;  %v4163_v42 = vpack.c.bf16 %v1777_v10, %v1776_v40  ;;  %v1763_v40 = vld [vmem:[#allocation8 + $0x578] sm:$0xff] }
 0x172   :  { %v1551_v22 = vmax.f32 %v5034_v11, 0.0  ;;  %v4133_v61 = vpack.c.bf16 %v1729_v16, %v1728_v17  ;;  %v1796_v10 = vld [vmem:[#allocation8 + $0x680] sm:$0xff]  ;;  %v1997_v41 = vld [vmem:[#allocation8 + $0xcc8] sm:$0xff] }
 0x173   :  { %4126 = vmatpush3.bf16.msra.mxu0 %v4125_v53  ;;  %v1448_v26 = vpop.f32.mrb[14].mxu0  ;;  %v1828_v16 = vld [vmem:[#allocation8 + $0x780] sm:$0xff] }
 0x174   :  { %4158 = vmatpush3.bf16.msra.mxu1 %v4157_v46  ;;  %4128 = vmatprep.subr.bf16.mxu0 %v4127_v60  ;;  %v1450_v53 = vpop.f32.mrb[15].mxu0  ;;  %v1519_v32 = vpop.f32.mrb[14].mxu1  ;;  %v1779_v46 = vld [vmem:[#allocation8 + $0x5f8] sm:$0xff]  ;;  %1583 = vst [vmem:[#allocation11 + $0xd8] sm:$0xff] %v1551_v22  ;;  %v1449_v60 = vadd.f32 %v1448_v26, %v339_v25  ;;  %v1812_v26 = vld [vmem:[#allocation8 + $0x700] sm:$0xff] }
 0x175   :  { %4160 = vmatprep.subr.bf16.mxu1 %v4159_v1  ;;  %v1451_v62 = vadd.f32 %v1450_v53, %v343_v34  ;;  %v1520_v7 = vadd.f32 %v1519_v32, %v347_v56  ;;  %v1762_v1 = vld [vmem:[#allocation8 + $0x570] sm:$0xff]  ;;  %v1521_v4 = vpop.f32.mrb[15].mxu1  ;;  %v4167_v8 = vpack.c.bf16 %v1779_v46, %v1778_v59  ;;  %v1799_v53 = vld [vmem:[#allocation8 + $0x698] sm:$0xff]  ;;  %v4173_v59 = vpack.c.bf16 %v1781_v13, %v1780_v12 }
 0x176   :  { %v1552_v2 = vmax.f32 %v1449_v60, 0.0  ;;  %v4169_v23 = vpack.c.bf16 %v1763_v40, %v1762_v1  ;;  %v1830_v56 = vld [vmem:[#allocation8 + $0x790] sm:$0xff]  ;;  %v1831_v32 = vld [vmem:[#allocation8 + $0x798] sm:$0xff]  ;;  %v4205_v46 = vpack.c.bf16 %v1813_v44, %v1812_v26  ;;  %v4175_v60 = vpack.c.bf16 %v1799_v53, %v1798_v45  ;;  %v1832_v1 = vld [vmem:[#allocation8 + $0x7a0] sm:$0xff] }
 0x177   :  { %4130 = vmatpush3.bf16.msra.mxu0 %v4129_v55  ;;  %v1553_v6 = vmax.f32 %v1451_v62, 0.0  ;;  %v1797_v55 = vld [vmem:[#allocation8 + $0x688] sm:$0xff]  ;;  %v1554_v17 = vmax.f32 %v1520_v7, 0.0  ;;  %v1782_v62 = vld [vmem:[#allocation8 + $0x610] sm:$0xff]  ;;  %v4207_v7 = vpack.c.bf16 %v1831_v32, %v1830_v56  ;;  %v1819_v13 = vld [vmem:[#allocation8 + $0x738] sm:$0xff] }
 0x178   :  { %4162 = vmatpush3.bf16.msra.mxu1 %v4161_v15  ;;  %4132 = vmatprep.subr.bf16.mxu0 %v4131_v50  ;;  %1584 = vst [vmem:[#allocation11 + $0xe0] sm:$0xff] %v1552_v2  ;;  %v1522_v15 = vadd.f32 %v1521_v4, %v351_v3  ;;  %v4137_v50 = vpack.c.bf16 %v1731_v51, %v1730_v48  ;;  %v1800_v48 = vld [vmem:[#allocation8 + $0x6a0] sm:$0xff]  ;;  %v1801_v51 = vld [vmem:[#allocation8 + $0x6a8] sm:$0xff] }
 0x179   :  { %4164 = vmatprep.subr.bf16.mxu1 %v4163_v42  ;;  %1585 = vst [vmem:[#allocation11 + $0xe8] sm:$0xff] %v1553_v6  ;;  %1586 = vst [vmem:[#allocation11 + $0xf0] sm:$0xff] %v1554_v17  ;;  %v4171_v25 = vpack.c.bf16 %v1797_v55, %v1796_v10  ;;  %v4203_v42 = vpack.c.bf16 %v1829_v21, %v1828_v16  ;;  %v1833_v2 = vld [vmem:[#allocation8 + $0x7a8] sm:$0xff]  ;;  %v4179_v4 = vpack.c.bf16 %v1801_v51, %v1800_v48  ;;  %v1816_v10 = vld [vmem:[#allocation8 + $0x720] sm:$0xff] }
 0x17a   :  { %v1555_v34 = vmax.f32 %v1522_v15, 0.0  ;;  %v1785_v40 = vld [vmem:[#allocation8 + $0x628] sm:$0xff]  ;;  %v4211_v55 = vpack.c.bf16 %v1833_v2, %v1832_v1  ;;  %v1802_v16 = vld [vmem:[#allocation8 + $0x6b0] sm:$0xff]  ;;  %v1804_v26 = vld [vmem:[#allocation8 + $0x6c0] sm:$0xff] }
 0x17b   :  { %4134 = vmatpush3.bf16.msra.mxu0 %v4133_v61  ;;  %v1783_v61 = vld [vmem:[#allocation8 + $0x618] sm:$0xff]  ;;  %v1817_v17 = vld [vmem:[#allocation8 + $0x728] sm:$0xff]  ;;  %v4183_v15 = vpack.c.bf16 %v1803_v24, %v1802_v16  ;;  %v1788_v44 = vld [vmem:[#allocation8 + $0x640] sm:$0xff] }
 0x17c   :  { %4166 = vmatpush3.bf16.msra.mxu1 %v4165_v49  ;;  %4136 = vmatprep.subr.bf16.mxu0 %v4135_v37  ;;  %1587 = vst [vmem:[#allocation11 + $0xf8] sm:$0xff] %v1555_v34  ;;  %v1814_v49 = vld [vmem:[#allocation8 + $0x710] sm:$0xff]  ;;  %v1815_v37 = vld [vmem:[#allocation8 + $0x718] sm:$0xff]  ;;  %v4177_v6 = vpack.c.bf16 %v1783_v61, %v1782_v62  ;;  %v4213_v21 = vpack.c.bf16 %v1817_v17, %v1816_v10  ;;  %v1837_v34 = vld [vmem:[#allocation8 + $0x7c8] sm:$0xff] }
 0x17d   :  { %4168 = vmatprep.subr.bf16.mxu1 %v4167_v8  ;;  %v4209_v3 = vpack.c.bf16 %v1815_v37, %v1814_v49  ;;  %v1784_v8 = vld [vmem:[#allocation8 + $0x620] sm:$0xff]  ;;  %v1789_v45 = vld [vmem:[#allocation8 + $0x648] sm:$0xff]  ;;  %v1839_v62 = vld [vmem:[#allocation8 + $0x7d8] sm:$0xff] }
 0x17e   :  { %v1820_v53 = vld [vmem:[#allocation8 + $0x740] sm:$0xff]  ;;  %v1821_v32 = vld [vmem:[#allocation8 + $0x748] sm:$0xff]  ;;  %v4189_v61 = vpack.c.bf16 %v1789_v45, %v1788_v44  ;;  %v1790_v37 = vld [vmem:[#allocation8 + $0x650] sm:$0xff] }
 0x17f   :  { %4138 = vmatpush3.bf16.msra.mxu0 %v4137_v50  ;;  %v1786_v50 = vld [vmem:[#allocation8 + $0x630] sm:$0xff]  ;;  %v4221_v49 = vpack.c.bf16 %v1821_v32, %v1820_v53  ;;  %v1791_v48 = vld [vmem:[#allocation8 + $0x658] sm:$0xff]  ;;  %v1792_v17 = vld [vmem:[#allocation8 + $0x660] sm:$0xff] }
 0x180   :  { %4170 = vmatpush3.bf16.msra.mxu1 %v4169_v23  ;;  %4172 = vmatprep.subr.bf16.mxu0 %v4171_v25  ;;  %v1787_v23 = vld [vmem:[#allocation8 + $0x638] sm:$0xff]  ;;  %v1818_v25 = vld [vmem:[#allocation8 + $0x730] sm:$0xff]  ;;  %v1793_v16 = vld [vmem:[#allocation8 + $0x668] sm:$0xff] }
 0x181   :  { %4204 = vmatprep.subr.bf16.mxu1 %v4203_v42  ;;  %v4185_v42 = vpack.c.bf16 %v1787_v23, %v1786_v50  ;;  %v4217_v28 = vpack.c.bf16 %v1819_v13, %v1818_v25  ;;  %v1822_v51 = vld [vmem:[#allocation8 + $0x750] sm:$0xff]  ;;  %v1823_v2 = vld [vmem:[#allocation8 + $0x758] sm:$0xff]  ;;  %v1824_v24 = vld [vmem:[#allocation8 + $0x760] sm:$0xff]  ;;  %v4197_v23 = vpack.c.bf16 %v1793_v16, %v1792_v17 }
 0x182   :  { %2452 = vmatmul.mubr.f32.vlgmr.msra.gmra.mrb[20].mxu0 %v1532_v36  ;;  %v1834_v36 = vld [vmem:[#allocation8 + $0x7b0] sm:$0xff]  ;;  %v4225_v10 = vpack.c.bf16 %v1823_v2, %v1822_v51  ;;  %v1843_v50 = vld [vmem:[#allocation8 + $0x7f8] sm:$0xff]  ;;  %v1893_v44 = vld [vmem:[#allocation8 + $0x988] sm:$0xff] }
 0x183   :  { %2522 = vmatmul.mubr.f32.vlgmr.msra.gmra.mrb[20].mxu1 %v1534_v39  ;;  %4174 = vmatpush3.bf16.msra.mxu0 %v4173_v59  ;;  %v4181_v39 = vpack.c.bf16 %v1785_v40, %v1784_v8  ;;  %v4215_v12 = vpack.c.bf16 %v1835_v0, %v1834_v36  ;;  %v1806_v59 = vld [vmem:[#allocation8 + $0x6d0] sm:$0xff]  ;;  %v1841_v8 = vld [vmem:[#allocation8 + $0x7e8] sm:$0xff]  ;;  %v4193_v40 = vpack.c.bf16 %v1791_v48, %v1790_v37  ;;  %v1844_v32 = vld [vmem:[#allocation8 + $0x800] sm:$0xff] }
 0x184   :  { %4206 = vmatpush3.bf16.msra.mxu1 %v4205_v46  ;;  %4176 = vmatprep.subr.bf16.mxu0 %v4175_v60  ;;  %v1807_v46 = vld [vmem:[#allocation8 + $0x6d8] sm:$0xff]  ;;  %v1838_v60 = vld [vmem:[#allocation8 + $0x7d0] sm:$0xff]  ;;  %v1825_v0 = vld [vmem:[#allocation8 + $0x768] sm:$0xff] }
 0x185   :  { %4208 = vmatprep.subr.bf16.mxu1 %v4207_v7  ;;  %2591 = vmatprep.mubr.f32.mxu0 %v1537_v31  ;;  %v1836_v31 = vld [vmem:[#allocation8 + $0x7c0] sm:$0xff]  ;;  %v4191_v7 = vpack.c.bf16 %v1807_v46, %v1806_v59  ;;  %v4223_v1 = vpack.c.bf16 %v1839_v62, %v1838_v60  ;;  %v4229_v25 = vpack.c.bf16 %v1825_v0, %v1824_v24  ;;  %v1794_v13 = vld [vmem:[#allocation8 + $0x670] sm:$0xff]  ;;  %v1845_v59 = vld [vmem:[#allocation8 + $0x808] sm:$0xff] }
 0x186   :  { %2661 = vmatprep.mubr.f32.mxu1 %v1539_v43  ;;  %v4187_v43 = vpack.c.bf16 %v1805_v20, %v1804_v26  ;;  %v4219_v56 = vpack.c.bf16 %v1837_v34, %v1836_v31  ;;  %v1795_v26 = vld [vmem:[#allocation8 + $0x678] sm:$0xff]  ;;  %v1826_v20 = vld [vmem:[#allocation8 + $0x770] sm:$0xff]  ;;  %v1876_v46 = vld [vmem:[#allocation8 + $0x900] sm:$0xff]  ;;  %v4237_v48 = vpack.c.bf16 %v1845_v59, %v1844_v32 }
 0x187   :  { %4178 = vmatpush3.bf16.msra.mxu0 %v4177_v6  ;;  %v1808_v6 = vld [vmem:[#allocation8 + $0x6e0] sm:$0xff]  ;;  %v1827_v34 = vld [vmem:[#allocation8 + $0x778] sm:$0xff]  ;;  %v4201_v45 = vpack.c.bf16 %v1795_v26, %v1794_v13  ;;  %v1877_v62 = vld [vmem:[#allocation8 + $0x908] sm:$0xff] }
 0x188   :  { %4210 = vmatpush3.bf16.msra.mxu1 %v4209_v3  ;;  %4180 = vmatprep.subr.bf16.mxu0 %v4179_v4  ;;  %v1809_v3 = vld [vmem:[#allocation8 + $0x6e8] sm:$0xff]  ;;  %v1840_v4 = vld [vmem:[#allocation8 + $0x7e0] sm:$0xff]  ;;  %v4233_v53 = vpack.c.bf16 %v1827_v34, %v1826_v20  ;;  %v1895_v37 = vld [vmem:[#allocation8 + $0x998] sm:$0xff]  ;;  %v4269_v51 = vpack.c.bf16 %v1877_v62, %v1876_v46 }
 0x189   :  { %4212 = vmatprep.subr.bf16.mxu1 %v4211_v55  ;;  %v4195_v55 = vpack.c.bf16 %v1809_v3, %v1808_v6  ;;  %v4227_v36 = vpack.c.bf16 %v1841_v8, %v1840_v4  ;;  %v1846_v2 = vld [vmem:[#allocation8 + $0x810] sm:$0xff]  ;;  %v1847_v6 = vld [vmem:[#allocation8 + $0x818] sm:$0xff]  ;;  %v1897_v17 = vld [vmem:[#allocation8 + $0x9a8] sm:$0xff] }
 0x18a   :  { %v1878_v3 = vld [vmem:[#allocation8 + $0x910] sm:$0xff]  ;;  %v1879_v8 = vld [vmem:[#allocation8 + $0x918] sm:$0xff]  ;;  %v4241_v16 = vpack.c.bf16 %v1847_v6, %v1846_v2  ;;  %v1848_v0 = vld [vmem:[#allocation8 + $0x820] sm:$0xff] }
 0x18b   :  { %4182 = vmatpush3.bf16.msra.mxu0 %v4181_v39  ;;  %v1810_v39 = vld [vmem:[#allocation8 + $0x6f0] sm:$0xff]  ;;  %v4273_v24 = vpack.c.bf16 %v1879_v8, %v1878_v3  ;;  %v1851_v26 = vld [vmem:[#allocation8 + $0x838] sm:$0xff]  ;;  %v1885_v32 = vld [vmem:[#allocation8 + $0x948] sm:$0xff] }
 0x18c   :  { %4214 = vmatpush3.bf16.msra.mxu1 %v4213_v21  ;;  %4184 = vmatprep.subr.bf16.mxu0 %v4183_v15  ;;  %v1811_v21 = vld [vmem:[#allocation8 + $0x6f8] sm:$0xff]  ;;  %v1842_v15 = vld [vmem:[#allocation8 + $0x7f0] sm:$0xff]  ;;  %v1872_v6 = vld [vmem:[#allocation8 + $0x8e0] sm:$0xff] }
 0x18d   :  { %4216 = vmatprep.subr.bf16.mxu1 %v4215_v12  ;;  %v4199_v12 = vpack.c.bf16 %v1811_v21, %v1810_v39  ;;  %v4231_v31 = vpack.c.bf16 %v1843_v50, %v1842_v15  ;;  %v1849_v39 = vld [vmem:[#allocation8 + $0x828] sm:$0xff]  ;;  %v1880_v21 = vld [vmem:[#allocation8 + $0x920] sm:$0xff]  ;;  %v1850_v13 = vld [vmem:[#allocation8 + $0x830] sm:$0xff] }
 0x18e   :  { %v1881_v50 = vld [vmem:[#allocation8 + $0x928] sm:$0xff]  ;;  %v1882_v20 = vld [vmem:[#allocation8 + $0x930] sm:$0xff]  ;;  %v1883_v34 = vld [vmem:[#allocation8 + $0x938] sm:$0xff] }
 0x18f   :  { %4186 = vmatpush3.bf16.msra.mxu0 %v4185_v42  ;;  %v1860_v42 = vld [vmem:[#allocation8 + $0x880] sm:$0xff]  ;;  %v4281_v33 = vpack.c.bf16 %v1883_v34, %v1882_v20  ;;  %v1870_v59 = vld [vmem:[#allocation8 + $0x8d0] sm:$0xff]  ;;  %v1871_v46 = vld [vmem:[#allocation8 + $0x8d8] sm:$0xff] }
 0x190   :  { %4218 = vmatpush3.bf16.msra.mxu1 %v4217_v28  ;;  %4188 = vmatprep.subr.bf16.mxu0 %v4187_v43  ;;  %v1861_v28 = vld [vmem:[#allocation8 + $0x888] sm:$0xff]  ;;  %v1892_v43 = vld [vmem:[#allocation8 + $0x980] sm:$0xff]  ;;  %v1903_v62 = vld [vmem:[#allocation8 + $0x9d8] sm:$0xff] }
 0x191   :  { %4220 = vmatprep.subr.bf16.mxu1 %v4219_v56  ;;  %v4235_v56 = vpack.c.bf16 %v1861_v28, %v1860_v42  ;;  %v4267_v60 = vpack.c.bf16 %v1893_v44, %v1892_v43  ;;  %v1868_v42 = vld [vmem:[#allocation8 + $0x8c0] sm:$0xff]  ;;  %v1901_v28 = vld [vmem:[#allocation8 + $0x9c8] sm:$0xff]  ;;  %v4249_v43 = vpack.c.bf16 %v1851_v26, %v1850_v13  ;;  %v1887_v2 = vld [vmem:[#allocation8 + $0x958] sm:$0xff] }
 0x192   :  { %v1852_v44 = vld [vmem:[#allocation8 + $0x840] sm:$0xff]  ;;  %v1873_v3 = vld [vmem:[#allocation8 + $0x8e8] sm:$0xff]  ;;  %v1891_v13 = vld [vmem:[#allocation8 + $0x978] sm:$0xff] }
 0x193   :  { %4190 = vmatpush3.bf16.msra.mxu0 %v4189_v61  ;;  %v1862_v61 = vld [vmem:[#allocation8 + $0x890] sm:$0xff]  ;;  %v1905_v8 = vld [vmem:[#allocation8 + $0x9e8] sm:$0xff]  ;;  %v1924_v26 = vld [vmem:[#allocation8 + $0xa80] sm:$0xff] }
 0x194   :  { %4222 = vmatpush3.bf16.msra.mxu1 %v4221_v49  ;;  %4192 = vmatprep.subr.bf16.mxu0 %v4191_v7  ;;  %v1863_v49 = vld [vmem:[#allocation8 + $0x898] sm:$0xff]  ;;  %v1894_v7 = vld [vmem:[#allocation8 + $0x990] sm:$0xff]  ;;  %v1925_v20 = vld [vmem:[#allocation8 + $0xa88] sm:$0xff] }
 0x195   :  { %4224 = vmatprep.subr.bf16.mxu1 %v4223_v1  ;;  %v4239_v1 = vpack.c.bf16 %v1863_v49, %v1862_v61  ;;  %v4271_v4 = vpack.c.bf16 %v1895_v37, %v1894_v7  ;;  %v4255_v7 = vpack.c.bf16 %v1871_v46, %v1870_v59  ;;  %v1854_v37 = vld [vmem:[#allocation8 + $0x850] sm:$0xff]  ;;  %v1957_v34 = vld [vmem:[#allocation8 + $0xb88] sm:$0xff] }
 0x197   :  { %4194 = vmatpush3.bf16.msra.mxu0 %v4193_v40  ;;  %v1864_v40 = vld [vmem:[#allocation8 + $0x8a0] sm:$0xff] }
 0x198   :  { %4226 = vmatpush3.bf16.msra.mxu1 %v4225_v10  ;;  %4196 = vmatprep.subr.bf16.mxu0 %v4195_v55  ;;  %v1865_v10 = vld [vmem:[#allocation8 + $0x8a8] sm:$0xff]  ;;  %v1896_v55 = vld [vmem:[#allocation8 + $0x9a0] sm:$0xff] }
 0x199   :  { %4228 = vmatprep.subr.bf16.mxu1 %v4227_v36  ;;  %v4243_v36 = vpack.c.bf16 %v1865_v10, %v1864_v40  ;;  %v4275_v15 = vpack.c.bf16 %v1897_v17, %v1896_v55  ;;  %v4259_v55 = vpack.c.bf16 %v1873_v3, %v1872_v6  ;;  %v1856_v17 = vld [vmem:[#allocation8 + $0x860] sm:$0xff] }
 0x19b   :  { %4198 = vmatpush3.bf16.msra.mxu0 %v4197_v23  ;;  %v1866_v23 = vld [vmem:[#allocation8 + $0x8b0] sm:$0xff] }
 0x19c   :  { %4230 = vmatpush3.bf16.msra.mxu1 %v4229_v25  ;;  %4200 = vmatprep.subr.bf16.mxu0 %v4199_v12  ;;  %v4277_v25 = vpack.c.bf16 %v1881_v50, %v1880_v21  ;;  %v4247_v12 = vpack.c.bf16 %v1867_v14, %v1866_v23  ;;  %v1875_v21 = vld [vmem:[#allocation8 + $0x8f8] sm:$0xff] }
 0x19d   :  { %4232 = vmatprep.subr.bf16.mxu1 %v4231_v31  ;;  %v1907_v50 = vld [vmem:[#allocation8 + $0x9f8] sm:$0xff] }
 0x19f   :  { %4202 = vmatpush3.bf16.msra.mxu0 %v4201_v45  ;;  %v1853_v45 = vld [vmem:[#allocation8 + $0x848] sm:$0xff] }
 0x1a0   :  { %4234 = vmatpush3.bf16.msra.mxu1 %v4233_v53  ;;  %4236 = vmatprep.subr.bf16.mxu0 %v4235_v56  ;;  %v1884_v53 = vld [vmem:[#allocation8 + $0x940] sm:$0xff]  ;;  %v4253_v61 = vpack.c.bf16 %v1853_v45, %v1852_v44  ;;  %v1941_v44 = vld [vmem:[#allocation8 + $0xb08] sm:$0xff]  ;;  %v1926_v45 = vld [vmem:[#allocation8 + $0xa90] sm:$0xff] }
 0x1a1   :  { %4268 = vmatprep.subr.bf16.mxu1 %v4267_v60  ;;  %v1902_v60 = vld [vmem:[#allocation8 + $0x9d0] sm:$0xff]  ;;  %v4285_v49 = vpack.c.bf16 %v1885_v32, %v1884_v53  ;;  %v1927_v53 = vld [vmem:[#allocation8 + $0xa98] sm:$0xff] }
 0x1a2   :  { %2592 = vmatmul.mubr.f32.vlgmr.msra.gmra.mrb[22].mxu0 %v1536_v27  ;;  %v1898_v27 = vld [vmem:[#allocation8 + $0x9b0] sm:$0xff]  ;;  %v1959_v32 = vld [vmem:[#allocation8 + $0xb98] sm:$0xff] }
 0x1a3   :  { %2662 = vmatmul.mubr.f32.vlgmr.msra.gmra.mrb[22].mxu1 %v1538_v30  ;;  %4238 = vmatpush3.bf16.msra.mxu0 %v4237_v48  ;;  %v4245_v30 = vpack.c.bf16 %v1849_v39, %v1848_v0  ;;  %v4279_v31 = vpack.c.bf16 %v1899_v52, %v1898_v27  ;;  %v1855_v48 = vld [vmem:[#allocation8 + $0x858] sm:$0xff]  ;;  %v1889_v0 = vld [vmem:[#allocation8 + $0x968] sm:$0xff]  ;;  %v1874_v39 = vld [vmem:[#allocation8 + $0x8f0] sm:$0xff] }
 0x1a4   :  { %4270 = vmatpush3.bf16.msra.mxu1 %v4269_v51  ;;  %4240 = vmatprep.subr.bf16.mxu0 %v4239_v1  ;;  %v1886_v51 = vld [vmem:[#allocation8 + $0x950] sm:$0xff]  ;;  %v4287_v1 = vpack.c.bf16 %v1903_v62, %v1902_v60  ;;  %v4257_v40 = vpack.c.bf16 %v1855_v48, %v1854_v37  ;;  %v4263_v27 = vpack.c.bf16 %v1875_v21, %v1874_v39  ;;  %v1943_v37 = vld [vmem:[#allocation8 + $0xb18] sm:$0xff]  ;;  %v1928_v48 = vld [vmem:[#allocation8 + $0xaa0] sm:$0xff] }
 0x1a5   :  { %4272 = vmatprep.subr.bf16.mxu1 %v4271_v4  ;;  %2731 = vmatprep.mubr.f32.mxu0 %v1541_v38  ;;  %v1900_v38 = vld [vmem:[#allocation8 + $0x9c0] sm:$0xff]  ;;  %v4289_v10 = vpack.c.bf16 %v1887_v2, %v1886_v51  ;;  %v1858_v52 = vld [vmem:[#allocation8 + $0x870] sm:$0xff]  ;;  %v4303_v60 = vpack.c.bf16 %v1927_v53, %v1926_v45  ;;  %v1929_v51 = vld [vmem:[#allocation8 + $0xaa8] sm:$0xff] }
 0x1a6   :  { %2801 = vmatprep.mubr.f32.mxu1 %v1543_v54  ;;  %v4251_v54 = vpack.c.bf16 %v1869_v19, %v1868_v42  ;;  %v4283_v56 = vpack.c.bf16 %v1901_v28, %v1900_v38  ;;  %v1904_v4 = vld [vmem:[#allocation8 + $0x9e0] sm:$0xff]  ;;  %v4299_v38 = vpack.c.bf16 %v1925_v20, %v1924_v26  ;;  %v1910_v62 = vld [vmem:[#allocation8 + $0xa10] sm:$0xff]  ;;  %v1961_v2 = vld [vmem:[#allocation8 + $0xba8] sm:$0xff] }
 0x1a7   :  { %4242 = vmatpush3.bf16.msra.mxu0 %v4241_v16  ;;  %v1857_v16 = vld [vmem:[#allocation8 + $0x868] sm:$0xff]  ;;  %v1908_v28 = vld [vmem:[#allocation8 + $0xa00] sm:$0xff]  ;;  %v1915_v39 = vld [vmem:[#allocation8 + $0xa38] sm:$0xff] }
 0x1a8   :  { %4274 = vmatpush3.bf16.msra.mxu1 %v4273_v24  ;;  %4244 = vmatprep.subr.bf16.mxu0 %v4243_v36  ;;  %v1888_v24 = vld [vmem:[#allocation8 + $0x960] sm:$0xff]  ;;  %v4291_v36 = vpack.c.bf16 %v1905_v8, %v1904_v4  ;;  %v4261_v23 = vpack.c.bf16 %v1857_v16, %v1856_v17  ;;  %v4307_v4 = vpack.c.bf16 %v1929_v51, %v1928_v48  ;;  %v1945_v17 = vld [vmem:[#allocation8 + $0xb28] sm:$0xff]  ;;  %v1930_v16 = vld [vmem:[#allocation8 + $0xab0] sm:$0xff] }
 0x1a9   :  { %4276 = vmatprep.subr.bf16.mxu1 %v4275_v15  ;;  %v1906_v15 = vld [vmem:[#allocation8 + $0x9f0] sm:$0xff]  ;;  %v4293_v14 = vpack.c.bf16 %v1889_v0, %v1888_v24  ;;  %v1912_v8 = vld [vmem:[#allocation8 + $0xa20] sm:$0xff]  ;;  %v1935_v20 = vld [vmem:[#allocation8 + $0xad8] sm:$0xff] }
 0x1aa   :  { %v1914_v0 = vld [vmem:[#allocation8 + $0xa30] sm:$0xff]  ;;  %v1936_v45 = vld [vmem:[#allocation8 + $0xae0] sm:$0xff]  ;;  %v1937_v53 = vld [vmem:[#allocation8 + $0xae8] sm:$0xff] }
 0x1ab   :  { %4246 = vmatpush3.bf16.msra.mxu0 %v4245_v30  ;;  %v1859_v30 = vld [vmem:[#allocation8 + $0x878] sm:$0xff]  ;;  %v1946_v21 = vld [vmem:[#allocation8 + $0xb30] sm:$0xff] }
 0x1ac   :  { %4278 = vmatpush3.bf16.msra.mxu1 %v4277_v25  ;;  %4248 = vmatprep.subr.bf16.mxu0 %v4247_v12  ;;  %v1890_v25 = vld [vmem:[#allocation8 + $0x970] sm:$0xff]  ;;  %v4295_v12 = vpack.c.bf16 %v1907_v50, %v1906_v15  ;;  %v4265_v42 = vpack.c.bf16 %v1859_v30, %v1858_v52  ;;  %v1947_v50 = vld [vmem:[#allocation8 + $0xb38] sm:$0xff]  ;;  %v1916_v52 = vld [vmem:[#allocation8 + $0xa40] sm:$0xff] }
 0x1ad   :  { %4280 = vmatprep.subr.bf16.mxu1 %v4279_v31  ;;  %v1956_v31 = vld [vmem:[#allocation8 + $0xb80] sm:$0xff]  ;;  %v4297_v19 = vpack.c.bf16 %v1891_v13, %v1890_v25  ;;  %v4345_v47 = vpack.c.bf16 %v1947_v50, %v1946_v21  ;;  %v1917_v30 = vld [vmem:[#allocation8 + $0xa48] sm:$0xff]  ;;  %v1934_v26 = vld [vmem:[#allocation8 + $0xad0] sm:$0xff] }
 0x1ae   :  { %v1948_v25 = vld [vmem:[#allocation8 + $0xb40] sm:$0xff]  ;;  %v1949_v13 = vld [vmem:[#allocation8 + $0xb48] sm:$0xff]  ;;  %v1938_v48 = vld [vmem:[#allocation8 + $0xaf0] sm:$0xff] }
 0x1af   :  { %4250 = vmatpush3.bf16.msra.mxu0 %v4249_v43  ;;  %v1909_v43 = vld [vmem:[#allocation8 + $0xa08] sm:$0xff]  ;;  %v1939_v51 = vld [vmem:[#allocation8 + $0xaf8] sm:$0xff]  ;;  %v2004_v21 = vld [vmem:[#allocation8 + $0xd00] sm:$0xff] }
 0x1b0   :  { %4282 = vmatpush3.bf16.msra.mxu1 %v4281_v33  ;;  %4252 = vmatprep.subr.bf16.mxu0 %v4251_v54  ;;  %v1940_v33 = vld [vmem:[#allocation8 + $0xb00] sm:$0xff]  ;;  %v4331_v54 = vpack.c.bf16 %v1957_v34, %v1956_v31  ;;  %v4301_v59 = vpack.c.bf16 %v1909_v43, %v1908_v28  ;;  %v1966_v31 = vld [vmem:[#allocation8 + $0xbd0] sm:$0xff]  ;;  %v1967_v34 = vld [vmem:[#allocation8 + $0xbd8] sm:$0xff] }
 0x1b1   :  { %4284 = vmatprep.subr.bf16.mxu1 %v4283_v56  ;;  %v1958_v56 = vld [vmem:[#allocation8 + $0xb90] sm:$0xff]  ;;  %v4333_v46 = vpack.c.bf16 %v1941_v44, %v1940_v33  ;;  %v1919_v43 = vld [vmem:[#allocation8 + $0xa58] sm:$0xff]  ;;  %v2005_v50 = vld [vmem:[#allocation8 + $0xd08] sm:$0xff] }
 0x1b2   :  { %v1918_v28 = vld [vmem:[#allocation8 + $0xa50] sm:$0xff]  ;;  %v1951_v44 = vld [vmem:[#allocation8 + $0xb58] sm:$0xff] }
 0x1b3   :  { %4254 = vmatpush3.bf16.msra.mxu0 %v4253_v61  ;;  %v1911_v61 = vld [vmem:[#allocation8 + $0xa18] sm:$0xff]  ;;  %v1950_v33 = vld [vmem:[#allocation8 + $0xb50] sm:$0xff] }
 0x1b4   :  { %4286 = vmatpush3.bf16.msra.mxu1 %v4285_v49  ;;  %4256 = vmatprep.subr.bf16.mxu0 %v4255_v7  ;;  %v1942_v49 = vld [vmem:[#allocation8 + $0xb10] sm:$0xff]  ;;  %v4335_v7 = vpack.c.bf16 %v1959_v32, %v1958_v56  ;;  %v4305_v6 = vpack.c.bf16 %v1911_v61, %v1910_v62  ;;  %v1968_v56 = vld [vmem:[#allocation8 + $0xbe0] sm:$0xff]  ;;  %v1969_v32 = vld [vmem:[#allocation8 + $0xbe8] sm:$0xff] }
 0x1b5   :  { %4288 = vmatprep.subr.bf16.mxu1 %v4287_v1  ;;  %v1960_v1 = vld [vmem:[#allocation8 + $0xba0] sm:$0xff]  ;;  %v4337_v3 = vpack.c.bf16 %v1943_v37, %v1942_v49  ;;  %v1921_v61 = vld [vmem:[#allocation8 + $0xa68] sm:$0xff] }
 0x1b6   :  { %v1920_v62 = vld [vmem:[#allocation8 + $0xa60] sm:$0xff]  ;;  %v1953_v37 = vld [vmem:[#allocation8 + $0xb68] sm:$0xff] }
 0x1b7   :  { %4258 = vmatpush3.bf16.msra.mxu0 %v4257_v40  ;;  %v1913_v40 = vld [vmem:[#allocation8 + $0xa28] sm:$0xff]  ;;  %v1952_v49 = vld [vmem:[#allocation8 + $0xb60] sm:$0xff] }
 0x1b8   :  { %4290 = vmatpush3.bf16.msra.mxu1 %v4289_v10  ;;  %4260 = vmatprep.subr.bf16.mxu0 %v4259_v55  ;;  %v1944_v10 = vld [vmem:[#allocation8 + $0xb20] sm:$0xff]  ;;  %v4339_v55 = vpack.c.bf16 %v1961_v2, %v1960_v1  ;;  %v1970_v1 = vld [vmem:[#allocation8 + $0xbf0] sm:$0xff]  ;;  %v1971_v2 = vld [vmem:[#allocation8 + $0xbf8] sm:$0xff] }
 0x1b9   :  { %4292 = vmatprep.subr.bf16.mxu1 %v4291_v36  ;;  %v4341_v24 = vpack.c.bf16 %v1945_v17, %v1944_v10  ;;  %v4311_v36 = vpack.c.bf16 %v1931_v9, %v1930_v16  ;;  %v1954_v10 = vld [vmem:[#allocation8 + $0xb70] sm:$0xff]  ;;  %v1955_v17 = vld [vmem:[#allocation8 + $0xb78] sm:$0xff]  ;;  %v1988_v16 = vld [vmem:[#allocation8 + $0xc80] sm:$0xff] }
 0x1ba   :  { %v1989_v9 = vld [vmem:[#allocation8 + $0xc88] sm:$0xff] }
 0x1bb   :  { %4262 = vmatpush3.bf16.msra.mxu0 %v4261_v23  ;;  %v1932_v23 = vld [vmem:[#allocation8 + $0xac0] sm:$0xff] }
 0x1bc   :  { %4294 = vmatpush3.bf16.msra.mxu1 %v4293_v14  ;;  %4264 = vmatprep.subr.bf16.mxu0 %v4263_v27  ;;  %v1965_v14 = vld [vmem:[#allocation8 + $0xbc8] sm:$0xff]  ;;  %v4313_v27 = vpack.c.bf16 %v1915_v39, %v1914_v0  ;;  %v1972_v0 = vld [vmem:[#allocation8 + $0xc00] sm:$0xff] }
 0x1bd   :  { %4296 = vmatprep.subr.bf16.mxu1 %v4295_v12  ;;  %v1973_v39 = vld [vmem:[#allocation8 + $0xc08] sm:$0xff] }
 0x1bf   :  { %4266 = vmatpush3.bf16.msra.mxu0 %v4265_v42  ;;  %v4317_v42 = vpack.c.bf16 %v1917_v30, %v1916_v52  ;;  %v1974_v52 = vld [vmem:[#allocation8 + $0xc10] sm:$0xff]  ;;  %v1975_v30 = vld [vmem:[#allocation8 + $0xc18] sm:$0xff] }
 0x1c0   :  { %4298 = vmatpush3.bf16.msra.mxu1 %v4297_v19  ;;  %4300 = vmatprep.subr.bf16.mxu0 %v4299_v38  ;;  %v4349_v19 = vpack.c.bf16 %v1949_v13, %v1948_v25  ;;  %v4319_v38 = vpack.c.bf16 %v1935_v20, %v1934_v26  ;;  %v2006_v25 = vld [vmem:[#allocation8 + $0xd10] sm:$0xff]  ;;  %v2007_v13 = vld [vmem:[#allocation8 + $0xd18] sm:$0xff]  ;;  %v1992_v26 = vld [vmem:[#allocation8 + $0xca0] sm:$0xff] }
 0x1c1   :  { %4332 = vmatprep.subr.bf16.mxu1 %v4331_v54  ;;  %v4351_v54 = vpack.c.bf16 %v1967_v34, %v1966_v31  ;;  %v1993_v20 = vld [vmem:[#allocation8 + $0xca8] sm:$0xff]  ;;  %v2024_v34 = vld [vmem:[#allocation8 + $0xda0] sm:$0xff] }
 0x1c2   :  { %2732 = vmatmul.mubr.f32.vlgmr.msra.gmra.mrb[24].mxu0 %v1540_v29  ;;  %v1962_v29 = vld [vmem:[#allocation8 + $0xbb0] sm:$0xff]  ;;  %v4506_v31 = vld [vmem:[#allocation11 + $0xa0] sm:$0xff] }
 0x1c3   :  { %2802 = vmatmul.mubr.f32.vlgmr.msra.gmra.mrb[24].mxu1 %v1542_v35  ;;  %4302 = vmatpush3.bf16.msra.mxu0 %v4301_v59  ;;  %v4309_v35 = vpack.c.bf16 %v1913_v40, %v1912_v8  ;;  %v4343_v15 = vpack.c.bf16 %v1963_v18, %v1962_v29  ;;  %v4321_v59 = vpack.c.bf16 %v1919_v43, %v1918_v28  ;;  %v1922_v8 = vld [vmem:[#allocation8 + $0xa70] sm:$0xff]  ;;  %v1923_v40 = vld [vmem:[#allocation8 + $0xa78] sm:$0xff]  ;;  %v2020_v29 = vld [vmem:[#allocation8 + $0xd80] sm:$0xff] }
 0x1c4   :  { %4334 = vmatpush3.bf16.msra.mxu1 %v4333_v46  ;;  %4304 = vmatprep.subr.bf16.mxu0 %v4303_v60  ;;  %v4353_v46 = vpack.c.bf16 %v1951_v44, %v1950_v33  ;;  %v4323_v60 = vpack.c.bf16 %v1937_v53, %v1936_v45  ;;  %v2021_v18 = vld [vmem:[#allocation8 + $0xd88] sm:$0xff]  ;;  %v4401_v28 = vpack.c.bf16 %v2007_v13, %v2006_v25  ;;  %v1976_v33 = vld [vmem:[#allocation8 + $0xc20] sm:$0xff]  ;;  %v2003_v13 = vld [vmem:[#allocation8 + $0xcf8] sm:$0xff] }
 0x1c5   :  { %4336 = vmatprep.subr.bf16.mxu1 %v4335_v7  ;;  %2871 = vmatprep.mubr.f32.mxu0 %v1545_v57  ;;  %v1964_v57 = vld [vmem:[#allocation8 + $0xbc0] sm:$0xff]  ;;  %v4355_v7 = vpack.c.bf16 %v1969_v32, %v1968_v56  ;;  %v4371_v43 = vpack.c.bf16 %v1993_v20, %v1992_v26  ;;  %v2009_v53 = vld [vmem:[#allocation8 + $0xd28] sm:$0xff]  ;;  %v1994_v56 = vld [vmem:[#allocation8 + $0xcb0] sm:$0xff] }
 0x1c6   :  { %2941 = vmatprep.mubr.f32.mxu1 %v1547_v63  ;;  %v4315_v63 = vpack.c.bf16 %v1933_v58, %v1932_v23  ;;  %v4347_v12 = vpack.c.bf16 %v1965_v14, %v1964_v57  ;;  %v1990_v23 = vld [vmem:[#allocation8 + $0xc90] sm:$0xff]  ;;  %v1991_v58 = vld [vmem:[#allocation8 + $0xc98] sm:$0xff]  ;;  %v2008_v44 = vld [vmem:[#allocation8 + $0xd20] sm:$0xff] }
 0x1c7   :  { %4306 = vmatpush3.bf16.msra.mxu0 %v4305_v6  ;;  %v4325_v6 = vpack.c.bf16 %v1921_v61, %v1920_v62  ;;  %v2022_v57 = vld [vmem:[#allocation8 + $0xd90] sm:$0xff]  ;;  %v2023_v14 = vld [vmem:[#allocation8 + $0xd98] sm:$0xff]  ;;  %v4405_v62 = vpack.c.bf16 %v2009_v53, %v2008_v44  ;;  %v2017_v25 = vld [vmem:[#allocation8 + $0xd68] sm:$0xff] }
 0x1c8   :  { %4338 = vmatpush3.bf16.msra.mxu1 %v4337_v3  ;;  %4308 = vmatprep.subr.bf16.mxu0 %v4307_v4  ;;  %v4357_v3 = vpack.c.bf16 %v1953_v37, %v1952_v49  ;;  %v4327_v4 = vpack.c.bf16 %v1939_v51, %v1938_v48  ;;  %v1995_v32 = vld [vmem:[#allocation8 + $0xcb8] sm:$0xff]  ;;  %v1978_v49 = vld [vmem:[#allocation8 + $0xc30] sm:$0xff]  ;;  %v2053_v44 = vld [vmem:[#allocation8 + $0xe88] sm:$0xff] }
 0x1c9   :  { %4340 = vmatprep.subr.bf16.mxu1 %v4339_v55  ;;  %v4359_v55 = vpack.c.bf16 %v1971_v2, %v1970_v1  ;;  %v4375_v61 = vpack.c.bf16 %v1995_v32, %v1994_v56  ;;  %v2010_v37 = vld [vmem:[#allocation8 + $0xd30] sm:$0xff]  ;;  %v2011_v51 = vld [vmem:[#allocation8 + $0xd38] sm:$0xff]  ;;  %v1996_v1 = vld [vmem:[#allocation8 + $0xcc0] sm:$0xff] }
 0x1ca   :  { %v2029_v2 = vld [vmem:[#allocation8 + $0xdc8] sm:$0xff]  ;;  %v4409_v11 = vpack.c.bf16 %v2011_v51, %v2010_v37  ;;  %v2034_v26 = vld [vmem:[#allocation8 + $0xdf0] sm:$0xff]  ;;  %v2035_v20 = vld [vmem:[#allocation8 + $0xdf8] sm:$0xff] }
 0x1cb   :  { %4310 = vmatpush3.bf16.msra.mxu0 %v4309_v35  ;;  %v4329_v35 = vpack.c.bf16 %v1923_v40, %v1922_v8  ;;  %v2012_v8 = vld [vmem:[#allocation8 + $0xd40] sm:$0xff]  ;;  %v2085_v53 = vld [vmem:[#allocation8 + $0xf88] sm:$0xff]  ;;  %v2055_v37 = vld [vmem:[#allocation8 + $0xe98] sm:$0xff] }
 0x1cc   :  { %4342 = vmatpush3.bf16.msra.mxu1 %v4341_v24  ;;  %4312 = vmatprep.subr.bf16.mxu0 %v4311_v36  ;;  %v4361_v24 = vpack.c.bf16 %v1955_v17, %v1954_v10  ;;  %v4363_v36 = vpack.c.bf16 %v1989_v9, %v1988_v16  ;;  %v2013_v10 = vld [vmem:[#allocation8 + $0xd48] sm:$0xff]  ;;  %v1999_v17 = vld [vmem:[#allocation8 + $0xcd8] sm:$0xff]  ;;  %v2030_v16 = vld [vmem:[#allocation8 + $0xdd0] sm:$0xff] }
 0x1cd   :  { %4344 = vmatprep.subr.bf16.mxu1 %v4343_v15  ;;  %v4395_v15 = vpack.c.bf16 %v2021_v18, %v2020_v29  ;;  %v2031_v9 = vld [vmem:[#allocation8 + $0xdd8] sm:$0xff]  ;;  %v4413_v18 = vpack.c.bf16 %v2013_v10, %v2012_v8  ;;  %v2086_v51 = vld [vmem:[#allocation8 + $0xf90] sm:$0xff]  ;;  %v4508_v8 = vld [vmem:[#allocation11 + $0xc0] sm:$0xff] }
 0x1ce   :  { %v2088_v10 = vld [vmem:[#allocation8 + $0xfa0] sm:$0xff] }
 0x1cf   :  { %4314 = vmatpush3.bf16.msra.mxu0 %v4313_v27  ;;  %v4365_v27 = vpack.c.bf16 %v1973_v39, %v1972_v0  ;;  %v2014_v0 = vld [vmem:[#allocation8 + $0xd50] sm:$0xff]  ;;  %v4415_v39 = vpack.c.bf16 %v2031_v9, %v2030_v16 }
 0x1d0   :  { %4346 = vmatpush3.bf16.msra.mxu1 %v4345_v47  ;;  %4316 = vmatprep.subr.bf16.mxu0 %v4315_v63  ;;  %v4397_v47 = vpack.c.bf16 %v2005_v50, %v2004_v21  ;;  %v4367_v63 = vpack.c.bf16 %v1991_v58, %v1990_v23  ;;  %v2015_v21 = vld [vmem:[#allocation8 + $0xd58] sm:$0xff]  ;;  %v2001_v50 = vld [vmem:[#allocation8 + $0xce8] sm:$0xff]  ;;  %v2032_v23 = vld [vmem:[#allocation8 + $0xde0] sm:$0xff] }
 0x1d1   :  { %4348 = vmatprep.subr.bf16.mxu1 %v4347_v12  ;;  %v4399_v12 = vpack.c.bf16 %v2023_v14, %v2022_v57  ;;  %v2033_v58 = vld [vmem:[#allocation8 + $0xde8] sm:$0xff]  ;;  %v4417_v14 = vpack.c.bf16 %v2015_v21, %v2014_v0  ;;  %v4511_v0 = vld [vmem:[#allocation11 + $0xf8] sm:$0xff] }
 0x1d2   :  { %v4510_v9 = vld [vmem:[#allocation11 + $0xe8] sm:$0xff] }
 0x1d3   :  { %4318 = vmatpush3.bf16.msra.mxu0 %v4317_v42  ;;  %v2025_v42 = vld [vmem:[#allocation8 + $0xda8] sm:$0xff] }
 0x1d4   :  { %4350 = vmatpush3.bf16.msra.mxu1 %v4349_v19  ;;  %4320 = vmatprep.subr.bf16.mxu0 %v4319_v38  ;;  %v4507_v19 = vld [vmem:[#allocation11 + $0xb0] sm:$0xff]  ;;  %v4369_v38 = vpack.c.bf16 %v1975_v30, %v1974_v52  ;;  %v4403_v45 = vpack.c.bf16 %v2025_v42, %v2024_v34  ;;  %v2016_v52 = vld [vmem:[#allocation8 + $0xd60] sm:$0xff]  ;;  %v4419_v30 = vpack.c.bf16 %v2033_v58, %v2032_v23  ;;  %v2073_v21 = vld [vmem:[#allocation8 + $0xf28] sm:$0xff] }
 0x1d5   :  { %4352 = vmatprep.subr.bf16.mxu1 %v4351_v54  ;;  %v1977_v54 = vld [vmem:[#allocation8 + $0xc28] sm:$0xff]  ;;  %v4421_v34 = vpack.c.bf16 %v2017_v25, %v2016_v52  ;;  %v2090_v23 = vld [vmem:[#allocation8 + $0xfb0] sm:$0xff]  ;;  %v2091_v58 = vld [vmem:[#allocation8 + $0xfb8] sm:$0xff] }
 0x1d6   :  { %v2074_v52 = vld [vmem:[#allocation8 + $0xf30] sm:$0xff]  ;;  %v2075_v25 = vld [vmem:[#allocation8 + $0xf38] sm:$0xff] }
 0x1d7   :  { %4322 = vmatpush3.bf16.msra.mxu0 %v4321_v59  ;;  %v2026_v59 = vld [vmem:[#allocation8 + $0xdb0] sm:$0xff] }
 0x1d8   :  { %4354 = vmatpush3.bf16.msra.mxu1 %v4353_v46  ;;  %4324 = vmatprep.subr.bf16.mxu0 %v4323_v60  ;;  %v2027_v46 = vld [vmem:[#allocation8 + $0xdb8] sm:$0xff]  ;;  %v4373_v60 = vpack.c.bf16 %v1977_v54, %v1976_v33  ;;  %v2052_v54 = vld [vmem:[#allocation8 + $0xe80] sm:$0xff] }
 0x1d9   :  { %4356 = vmatprep.subr.bf16.mxu1 %v4355_v7  ;;  %v1979_v7 = vld [vmem:[#allocation8 + $0xc38] sm:$0xff]  ;;  %v4407_v48 = vpack.c.bf16 %v2027_v46, %v2026_v59  ;;  %v4427_v59 = vpack.c.bf16 %v2053_v44, %v2052_v54  ;;  %v2036_v46 = vld [vmem:[#allocation8 + $0xe00] sm:$0xff]  ;;  %v2062_v54 = vld [vmem:[#allocation8 + $0xed0] sm:$0xff] }
 0x1da   :  { %v2019_v33 = vld [vmem:[#allocation8 + $0xd78] sm:$0xff] }
 0x1db   :  { %4326 = vmatpush3.bf16.msra.mxu0 %v4325_v6  ;;  %v4377_v6 = vpack.c.bf16 %v1979_v7, %v1978_v49  ;;  %v2069_v49 = vld [vmem:[#allocation8 + $0xf08] sm:$0xff]  ;;  %v2054_v7 = vld [vmem:[#allocation8 + $0xe90] sm:$0xff]  ;;  %v2063_v44 = vld [vmem:[#allocation8 + $0xed8] sm:$0xff] }
 0x1dc   :  { %4358 = vmatpush3.bf16.msra.mxu1 %v4357_v3  ;;  %4328 = vmatprep.subr.bf16.mxu0 %v4327_v4  ;;  %v1980_v3 = vld [vmem:[#allocation8 + $0xc40] sm:$0xff]  ;;  %v1981_v4 = vld [vmem:[#allocation8 + $0xc48] sm:$0xff] }
 0x1dd   :  { %4360 = vmatprep.subr.bf16.mxu1 %v4359_v55  ;;  %v1998_v55 = vld [vmem:[#allocation8 + $0xcd0] sm:$0xff]  ;;  %v4381_v29 = vpack.c.bf16 %v1981_v4, %v1980_v3  ;;  %v2056_v3 = vld [vmem:[#allocation8 + $0xea0] sm:$0xff]  ;;  %v2057_v4 = vld [vmem:[#allocation8 + $0xea8] sm:$0xff] }
 0x1df   :  { %4330 = vmatpush3.bf16.msra.mxu0 %v4329_v35  ;;  %v4383_v35 = vpack.c.bf16 %v1999_v17, %v1998_v55  ;;  %v2089_v55 = vld [vmem:[#allocation8 + $0xfa8] sm:$0xff]  ;;  %v4509_v17 = vld [vmem:[#allocation11 + $0xd0] sm:$0xff] }
 0x1e0   :  { %4362 = vmatpush3.bf16.msra.mxu1 %v4361_v24  ;;  %4364 = vmatprep.subr.bf16.mxu0 %v4363_v36  ;;  %v1982_v24 = vld [vmem:[#allocation8 + $0xc50] sm:$0xff]  ;;  %v1983_v36 = vld [vmem:[#allocation8 + $0xc58] sm:$0xff] }
 0x1e1   :  { %4396 = vmatprep.subr.bf16.mxu1 %v4395_v15  ;;  %v2000_v15 = vld [vmem:[#allocation8 + $0xce0] sm:$0xff]  ;;  %v4385_v57 = vpack.c.bf16 %v1983_v36, %v1982_v24  ;;  %v2041_v24 = vld [vmem:[#allocation8 + $0xe28] sm:$0xff] }
 0x1e2   :  { %2872 = vmatmul.mubr.f32.vlgmr.msra.gmra.mrb[26].mxu0 %v4506_v31  ;;  %v2072_v36 = vld [vmem:[#allocation8 + $0xf20] sm:$0xff] }
 0x1e3   :  { %2942 = vmatmul.mubr.f32.vlgmr.msra.gmra.mrb[26].mxu1 %v4507_v19  ;;  %4366 = vmatpush3.bf16.msra.mxu0 %v4365_v27  ;;  %v4387_v27 = vpack.c.bf16 %v2001_v50, %v2000_v15  ;;  %v1986_v19 = vld [vmem:[#allocation8 + $0xc70] sm:$0xff]  ;;  %v2059_v50 = vld [vmem:[#allocation8 + $0xeb8] sm:$0xff] }
 0x1e4   :  { %4398 = vmatpush3.bf16.msra.mxu1 %v4397_v47  ;;  %4368 = vmatprep.subr.bf16.mxu0 %v4367_v63  ;;  %v1984_v47 = vld [vmem:[#allocation8 + $0xc60] sm:$0xff]  ;;  %v1985_v63 = vld [vmem:[#allocation8 + $0xc68] sm:$0xff]  ;;  %v2058_v15 = vld [vmem:[#allocation8 + $0xeb0] sm:$0xff] }
 0x1e5   :  { %4400 = vmatprep.subr.bf16.mxu1 %v4399_v12  ;;  %3011 = vmatprep.mubr.f32.mxu0 %v1549_v5  ;;  %v2028_v5 = vld [vmem:[#allocation8 + $0xdc0] sm:$0xff]  ;;  %v2002_v12 = vld [vmem:[#allocation8 + $0xcf0] sm:$0xff]  ;;  %v4389_v31 = vpack.c.bf16 %v1985_v63, %v1984_v47  ;;  %v2043_v63 = vld [vmem:[#allocation8 + $0xe38] sm:$0xff] }
 0x1e6   :  { %3081 = vmatprep.mubr.f32.mxu1 %v1551_v22  ;;  %v4379_v22 = vpack.c.bf16 %v1997_v41, %v1996_v1  ;;  %v4411_v40 = vpack.c.bf16 %v2029_v2, %v2028_v5  ;;  %v4391_v42 = vpack.c.bf16 %v2003_v13, %v2002_v12  ;;  %v2087_v1 = vld [vmem:[#allocation8 + $0xf98] sm:$0xff]  ;;  %v2038_v5 = vld [vmem:[#allocation8 + $0xe10] sm:$0xff]  ;;  %v2060_v12 = vld [vmem:[#allocation8 + $0xec0] sm:$0xff] }
 0x1e7   :  { %4370 = vmatpush3.bf16.msra.mxu0 %v4369_v38  ;;  %v1987_v38 = vld [vmem:[#allocation8 + $0xc78] sm:$0xff]  ;;  %v2042_v47 = vld [vmem:[#allocation8 + $0xe30] sm:$0xff]  ;;  %v2061_v13 = vld [vmem:[#allocation8 + $0xec8] sm:$0xff] }
 0x1e8   :  { %4402 = vmatpush3.bf16.msra.mxu1 %v4401_v28  ;;  %4372 = vmatprep.subr.bf16.mxu0 %v4371_v43  ;;  %v2018_v28 = vld [vmem:[#allocation8 + $0xd70] sm:$0xff]  ;;  %v4423_v43 = vpack.c.bf16 %v2035_v20, %v2034_v26  ;;  %v4393_v56 = vpack.c.bf16 %v1987_v38, %v1986_v19  ;;  %v2039_v2 = vld [vmem:[#allocation8 + $0xe18] sm:$0xff]  ;;  %v2092_v26 = vld [vmem:[#allocation8 + $0xfc0] sm:$0xff] }
 0x1e9   :  { %4404 = vmatprep.subr.bf16.mxu1 %v4403_v45  ;;  %v2084_v45 = vld [vmem:[#allocation8 + $0xf80] sm:$0xff]  ;;  %v4425_v32 = vpack.c.bf16 %v2019_v33, %v2018_v28  ;;  %v4433_v16 = vpack.c.bf16 %v2039_v2, %v2038_v5  ;;  %v2093_v20 = vld [vmem:[#allocation8 + $0xfc8] sm:$0xff] }
 0x1ea   :  { %v2044_v19 = vld [vmem:[#allocation8 + $0xe40] sm:$0xff]  ;;  %v2045_v38 = vld [vmem:[#allocation8 + $0xe48] sm:$0xff] }
 0x1eb   :  { %4374 = vmatpush3.bf16.msra.mxu0 %v4373_v60  ;;  %v2037_v60 = vld [vmem:[#allocation8 + $0xe08] sm:$0xff]  ;;  %v2076_v28 = vld [vmem:[#allocation8 + $0xf40] sm:$0xff] }
 0x1ec   :  { %4406 = vmatpush3.bf16.msra.mxu1 %v4405_v62  ;;  %4376 = vmatprep.subr.bf16.mxu0 %v4375_v61  ;;  %v4459_v62 = vpack.c.bf16 %v2085_v53, %v2084_v45  ;;  %v2068_v61 = vld [vmem:[#allocation8 + $0xf00] sm:$0xff]  ;;  %v2077_v33 = vld [vmem:[#allocation8 + $0xf48] sm:$0xff]  ;;  %v2094_v45 = vld [vmem:[#allocation8 + $0xfd0] sm:$0xff] }
 0x1ed   :  { %4408 = vmatprep.subr.bf16.mxu1 %v4407_v48  ;;  %v4429_v48 = vpack.c.bf16 %v2037_v60, %v2036_v46  ;;  %v4461_v41 = vpack.c.bf16 %v2069_v49, %v2068_v61  ;;  %v2095_v53 = vld [vmem:[#allocation8 + $0xfd8] sm:$0xff]  ;;  %v2046_v46 = vld [vmem:[#allocation8 + $0xe50] sm:$0xff]  ;;  %v2048_v2 = vld [vmem:[#allocation8 + $0xe60] sm:$0xff] }
 0x1ee   :  { %v2047_v60 = vld [vmem:[#allocation8 + $0xe58] sm:$0xff]  ;;  %v4479_v61 = vpack.c.bf16 %v2095_v53, %v2094_v45 }
 0x1ef   :  { %4378 = vmatpush3.bf16.msra.mxu0 %v4377_v6  ;;  %v2070_v6 = vld [vmem:[#allocation8 + $0xf10] sm:$0xff]  ;;  %v2079_v49 = vld [vmem:[#allocation8 + $0xf58] sm:$0xff] }
 0x1f0   :  { %4410 = vmatpush3.bf16.msra.mxu1 %v4409_v11  ;;  %4380 = vmatprep.subr.bf16.mxu0 %v4379_v22  ;;  %v4431_v11 = vpack.c.bf16 %v2055_v37, %v2054_v7  ;;  %v2071_v22 = vld [vmem:[#allocation8 + $0xf18] sm:$0xff]  ;;  %v2064_v7 = vld [vmem:[#allocation8 + $0xee0] sm:$0xff]  ;;  %v2065_v37 = vld [vmem:[#allocation8 + $0xee8] sm:$0xff] }
 0x1f1   :  { %4412 = vmatprep.subr.bf16.mxu1 %v4411_v40  ;;  %v4463_v40 = vpack.c.bf16 %v2087_v1, %v2086_v51  ;;  %v2097_v51 = vld [vmem:[#allocation8 + $0xfe8] sm:$0xff]  ;;  %v4449_v1 = vpack.c.bf16 %v2047_v60, %v2046_v46  ;;  %v4451_v5 = vpack.c.bf16 %v2065_v37, %v2064_v7 }
 0x1f3   :  { %4382 = vmatpush3.bf16.msra.mxu0 %v4381_v29  ;;  %v4465_v29 = vpack.c.bf16 %v2071_v22, %v2070_v6  ;;  %v2049_v6 = vld [vmem:[#allocation8 + $0xe68] sm:$0xff] }
 0x1f4   :  { %4414 = vmatpush3.bf16.msra.mxu1 %v4413_v18  ;;  %4384 = vmatprep.subr.bf16.mxu0 %v4383_v35  ;;  %v4435_v18 = vpack.c.bf16 %v2057_v4, %v2056_v3  ;;  %v2040_v35 = vld [vmem:[#allocation8 + $0xe20] sm:$0xff]  ;;  %v2081_v4 = vld [vmem:[#allocation8 + $0xf68] sm:$0xff] }
 0x1f5   :  { %4416 = vmatprep.subr.bf16.mxu1 %v4415_v39  ;;  %v4467_v39 = vpack.c.bf16 %v2089_v55, %v2088_v10  ;;  %v3290_v55 = vld [vmem:[#allocation10] ss:$0 sm:$0xff] }
 0x1f7   :  { %4386 = vmatpush3.bf16.msra.mxu0 %v4385_v57  ;;  %v4437_v57 = vpack.c.bf16 %v2041_v24, %v2040_v35  ;;  %v4453_v35 = vpack.c.bf16 %v2049_v6, %v2048_v2 }
 0x1f8   :  { %4418 = vmatpush3.bf16.msra.mxu1 %v4417_v14  ;;  %4388 = vmatprep.subr.bf16.mxu0 %v4387_v27  ;;  %v4469_v14 = vpack.c.bf16 %v2073_v21, %v2072_v36  ;;  %v4439_v27 = vpack.c.bf16 %v2059_v50, %v2058_v15  ;;  %v2051_v21 = vld [vmem:[#allocation8 + $0xe78] sm:$0xff] }
 0x1f9   :  { %4420 = vmatprep.subr.bf16.mxu1 %v4419_v30  ;;  %v4471_v30 = vpack.c.bf16 %v2091_v58, %v2090_v23  ;;  %v2082_v23 = vld [vmem:[#allocation8 + $0xf70] sm:$0xff]  ;;  %v2083_v58 = vld [vmem:[#allocation8 + $0xf78] sm:$0xff] }
 0x1fb   :  { %4390 = vmatpush3.bf16.msra.mxu0 %v4389_v31  ;;  %v4441_v31 = vpack.c.bf16 %v2043_v63, %v2042_v47  ;;  %v4512_v47 = vld [vmem:[#allocation11 + $0xe0] sm:$0xff]  ;;  %v4513_v63 = vld [vmem:[#allocation11 + $0xf0] sm:$0xff] }
 0x1fc   :  { %4422 = vmatpush3.bf16.msra.mxu1 %v4421_v34  ;;  %4392 = vmatprep.subr.bf16.mxu0 %v4391_v42  ;;  %v4473_v34 = vpack.c.bf16 %v2075_v25, %v2074_v52  ;;  %v4443_v42 = vpack.c.bf16 %v2061_v13, %v2060_v12 }
 0x1fd   :  { %4424 = vmatprep.subr.bf16.mxu1 %v4423_v43  ;;  %v4475_v43 = vpack.c.bf16 %v2093_v20, %v2092_v26 }
 0x1ff   :  { %4394 = vmatpush3.bf16.msra.mxu0 %v4393_v56  ;;  %v4445_v56 = vpack.c.bf16 %v2045_v38, %v2044_v19 }
 0x200   :  { %4426 = vmatpush3.bf16.msra.mxu1 %v4425_v32  ;;  %4428 = vmatprep.subr.bf16.mxu0 %v4427_v59  ;;  %v4477_v32 = vpack.c.bf16 %v2077_v33, %v2076_v28  ;;  %v4447_v59 = vpack.c.bf16 %v2063_v44, %v2062_v54 }
 0x201   :  { %4460 = vmatprep.subr.bf16.mxu1 %v4459_v62  ;;  %v2078_v62 = vld [vmem:[#allocation8 + $0xf50] sm:$0xff] }
 0x202   :  { %3012 = vmatmul.mubr.f32.vlgmr.msra.gmra.mrb[28].mxu0 %v4508_v8  ;;  %v2066_v8 = vld [vmem:[#allocation8 + $0xef0] sm:$0xff] }
 0x203   :  { %3082 = vmatmul.mubr.f32.vlgmr.msra.gmra.mrb[28].mxu1 %v4509_v17  ;;  %4430 = vmatpush3.bf16.msra.mxu0 %v4429_v48  ;;  %v2096_v48 = vld [vmem:[#allocation8 + $0xfe0] sm:$0xff] }
 0x204   :  { %3151 = vmatprep.mubr.f32.mxu0 %v4510_v9  ;;  %4462 = vmatpush3.bf16.msra.mxu1 %v4461_v41  ;;  %v4481_v41 = vpack.c.bf16 %v2079_v49, %v2078_v62  ;;  %v4483_v3 = vpack.c.bf16 %v2097_v51, %v2096_v48  ;;  %v2099_v9 = vld [vmem:[#allocation8 + $0xff8] sm:$0xff] }
 0x205   :  { %3221 = vmatprep.mubr.f32.mxu1 %v4511_v0  ;;  %4432 = vmatprep.subr.bf16.mxu0 %v4431_v11  ;;  %v2080_v11 = vld [vmem:[#allocation8 + $0xf60] sm:$0xff] }
 0x206   :  { %4464 = vmatprep.subr.bf16.mxu1 %v4463_v40  ;;  %v2067_v40 = vld [vmem:[#allocation8 + $0xef8] sm:$0xff]  ;;  %v4485_v36 = vpack.c.bf16 %v2081_v4, %v2080_v11 }
 0x207   :  { %4434 = vmatpush3.bf16.msra.mxu0 %v4433_v16  ;;  %v2098_v16 = vld [vmem:[#allocation8 + $0xff0] sm:$0xff]  ;;  %v4455_v0 = vpack.c.bf16 %v2067_v40, %v2066_v8 }
 0x208   :  { %4466 = vmatpush3.bf16.msra.mxu1 %v4465_v29  ;;  %4436 = vmatprep.subr.bf16.mxu0 %v4435_v18  ;;  %v4487_v50 = vpack.c.bf16 %v2099_v9, %v2098_v16 }
 0x209   :  { %4468 = vmatprep.subr.bf16.mxu1 %v4467_v39  ;;  %v2050_v39 = vld [vmem:[#allocation8 + $0xe70] sm:$0xff] }
 0x20b   :  { %4438 = vmatpush3.bf16.msra.mxu0 %v4437_v57 }
 0x20c   :  { %4470 = vmatpush3.bf16.msra.mxu1 %v4469_v14  ;;  %4440 = vmatprep.subr.bf16.mxu0 %v4439_v27  ;;  %v4457_v14 = vpack.c.bf16 %v2051_v21, %v2050_v39  ;;  %v4489_v27 = vpack.c.bf16 %v2083_v58, %v2082_v23 }
 0x20d   :  { %4472 = vmatprep.subr.bf16.mxu1 %v4471_v30 }
 0x20f   :  { %4442 = vmatpush3.bf16.msra.mxu0 %v4441_v31 }
 0x210   :  { %4474 = vmatpush3.bf16.msra.mxu1 %v4473_v34  ;;  %4444 = vmatprep.subr.bf16.mxu0 %v4443_v42 }
 0x211   :  { %4476 = vmatprep.subr.bf16.mxu1 %v4475_v43 }
 0x213   :  { %4446 = vmatpush3.bf16.msra.mxu0 %v4445_v56 }
 0x214   :  { %4478 = vmatpush3.bf16.msra.mxu1 %v4477_v32  ;;  %4448 = vmatprep.subr.bf16.mxu0 %v4447_v59 }
 0x215   :  { %v3323_v22 = vpop.f32.mrb[16].mxu0  ;;  %4480 = vmatprep.subr.bf16.mxu1 %v4479_v61 }
 0x216   :  { %v3358_v10 = vpop.f32.mrb[16].mxu1  ;;  %v3324_v17 = vpop.f32.mrb[17].mxu0 }
 0x217   :  { %v3325_v29 = vadd.f32 %v3324_v17, %v3323_v22  ;;  %v3359_v18 = vpop.f32.mrb[17].mxu1  ;;  %4450 = vmatpush3.bf16.msra.mxu0 %v4449_v1 }
 0x218   :  { %v3360_v24 = vadd.f32 %v3359_v18, %v3358_v10  ;;  %4482 = vmatpush3.bf16.msra.mxu1 %v4481_v41  ;;  %4452 = vmatprep.subr.bf16.mxu0 %v4451_v5 }
 0x219   :  { %v2174_v15 = vadd.f32 %v3325_v29, %v3290_v55  ;;  %4484 = vmatprep.subr.bf16.mxu1 %v4483_v3 }
 0x21b   :  { %v2244_v57 = vadd.f32 %v3360_v24, %v2174_v15  ;;  %4454 = vmatpush3.bf16.msra.mxu0 %v4453_v35 }
 0x21c   :  { %4486 = vmatpush3.bf16.msra.mxu1 %v4485_v36  ;;  %4456 = vmatprep.subr.bf16.mxu0 %v4455_v0 }
 0x21d   :  { %4488 = vmatprep.subr.bf16.mxu1 %v4487_v50 }
 0x21f   :  { %4458 = vmatpush3.bf16.msra.mxu0 %v4457_v14 }
 0x220   :  { %4490 = vmatpush3.bf16.msra.mxu1 %v4489_v27 }
 0x222   :  { %3152 = vmatmul.mubr.f32.vlgmr.msra.gmra.mrb[30].mxu0 %v4512_v47 }
 0x223   :  { %3222 = vmatmul.mubr.f32.vlgmr.msra.gmra.mrb[30].mxu1 %v4513_v63 }
 0x235   :  { %v3393_v52 = vpop.f32.mrb[18].mxu0 }
 0x236   :  { %v3428_v30 = vpop.f32.mrb[18].mxu1  ;;  %v3394_v25 = vpop.f32.mrb[19].mxu0 }
 0x237   :  { %v3395_v12 = vadd.f32 %v3394_v25, %v3393_v52  ;;  %v3429_v13 = vpop.f32.mrb[19].mxu1 }
 0x238   :  { %v3430_v26 = vadd.f32 %v3429_v13, %v3428_v30 }
 0x239   :  { %v2314_v20 = vadd.f32 %v3395_v12, %v2244_v57 }
 0x23b   :  { %v2384_v31 = vadd.f32 %v3430_v26, %v2314_v20 }
 0x255   :  { %v3463_v34 = vpop.f32.mrb[20].mxu0 }
 0x256   :  { %v3498_v42 = vpop.f32.mrb[20].mxu1  ;;  %v3464_v19 = vpop.f32.mrb[21].mxu0 }
 0x257   :  { %v3465_v38 = vadd.f32 %v3464_v19, %v3463_v34  ;;  %v3499_v28 = vpop.f32.mrb[21].mxu1 }
 0x258   :  { %v3500_v43 = vadd.f32 %v3499_v28, %v3498_v42 }
 0x259   :  { %v2454_v33 = vadd.f32 %v3465_v38, %v2384_v31 }
 0x25b   :  { %v2524_v54 = vadd.f32 %v3500_v43, %v2454_v33 }
 0x275   :  { %v3533_v44 = vpop.f32.mrb[22].mxu0 }
 0x276   :  { %v3568_v45 = vpop.f32.mrb[22].mxu1  ;;  %v3534_v53 = vpop.f32.mrb[23].mxu0 }
 0x277   :  { %v3535_v56 = vadd.f32 %v3534_v53, %v3533_v44  ;;  %v3569_v32 = vpop.f32.mrb[23].mxu1 }
 0x278   :  { %v3570_v59 = vadd.f32 %v3569_v32, %v3568_v45 }
 0x279   :  { %v2594_v46 = vadd.f32 %v3535_v56, %v2524_v54 }
 0x27b   :  { %v2664_v60 = vadd.f32 %v3570_v59, %v2594_v46 }
 0x27c   :  { %4635 = shalt.err (!%p4632_p2)
}
 0x27d   :  { %s4636_s18 = scalar_lea.hbm %s5118_s5, 4096 }
 0x27e   :  { %p4637_p3 = scmp.ne.s32.totalorder %s5118_s5, %s4636_s18  ;;  %p4640_p4 = scmp.lt.u32.totalorder %s4636_s18, %s5118_s5 }
 0x280   :  { %p4642_p5 = pnand %p4640_p4, %p4637_p3 }
 0x282   :  { %4645 = shalt.err (!%p4642_p5)
}
 0x283   :  { %3239 = dma.vmem_to_hbm [thread:$0]  %s3237_s15, 4096, %s5118_s5, [#allocation4]  }
 0x284   :  { %s4711_s5 = smov [#allocation12]  }
 0x285   :  { %s3246_s1 = sshll.u32 %s4711_s5, 4  ;;  %s3247_s1 = int_to_ptr.vmem [resolvable:$true] %s3246_s1 }
 0x286   :  { %s4646_s0 = scalar_lea.vmem %s3247_s1, 128  ;;  %p4651_p7 = scmp.lt.s32.totalorder %s3247_s1, %s3247_s1 }
 0x287   :  { %p4647_p6 = scmp.ne.s32.totalorder %s3247_s1, %s4646_s0  ;;  %p4652_p8 = scmp.lt.s32.totalorder %s4646_s0, %s4646_s0 }
 0x289   :  { %p4653_p9 = por %p4652_p8, %p4651_p7 }
 0x28b   :  { %p4654_p10 = pnand %p4653_p9, %p4647_p6 }
 0x295   :  { %v3603_v62 = vpop.f32.mrb[24].mxu0 }
 0x296   :  { %v3638_v61 = vpop.f32.mrb[24].mxu1  ;;  %v3604_v49 = vpop.f32.mrb[25].mxu0 }
 0x297   :  { %v3605_v7 = vadd.f32 %v3604_v49, %v3603_v62  ;;  %v3639_v37 = vpop.f32.mrb[25].mxu1 }
 0x298   :  { %v3640_v48 = vadd.f32 %v3639_v37, %v3638_v61 }
 0x299   :  { %v2734_v51 = vadd.f32 %v3605_v7, %v2664_v60 }
 0x29b   :  { %v2804_v1 = vadd.f32 %v3640_v48, %v2734_v51 }
 0x2b5   :  { %v3673_v41 = vpop.f32.mrb[26].mxu0 }
 0x2b6   :  { %v3708_v5 = vpop.f32.mrb[26].mxu1  ;;  %v3674_v2 = vpop.f32.mrb[27].mxu0 }
 0x2b7   :  { %v3675_v6 = vadd.f32 %v3674_v2, %v3673_v41  ;;  %v3709_v11 = vpop.f32.mrb[27].mxu1 }
 0x2b8   :  { %v3710_v22 = vadd.f32 %v3709_v11, %v3708_v5 }
 0x2b9   :  { %v2874_v3 = vadd.f32 %v3675_v6, %v2804_v1 }
 0x2bb   :  { %v2944_v4 = vadd.f32 %v3710_v22, %v2874_v3 }
 0x2d5   :  { %v3743_v8 = vpop.f32.mrb[28].mxu0 }
 0x2d6   :  { %v3778_v40 = vpop.f32.mrb[28].mxu1  ;;  %v3744_v10 = vpop.f32.mrb[29].mxu0 }
 0x2d7   :  { %v3745_v55 = vadd.f32 %v3744_v10, %v3743_v8  ;;  %v3779_v17 = vpop.f32.mrb[29].mxu1 }
 0x2d8   :  { %v3780_v16 = vadd.f32 %v3779_v17, %v3778_v40 }
 0x2d9   :  { %v3014_v9 = vadd.f32 %v3745_v55, %v2944_v4 }
 0x2db   :  { %v3084_v29 = vadd.f32 %v3780_v16, %v3014_v9 }
 0x2f5   :  { %v3813_v18 = vpop.f32.mrb[30].mxu0 }
 0x2f6   :  { %v3848_v35 = vpop.f32.mrb[30].mxu1  ;;  %v3814_v24 = vpop.f32.mrb[31].mxu0 }
 0x2f7   :  { %v3815_v36 = vadd.f32 %v3814_v24, %v3813_v18  ;;  %v3849_v0 = vpop.f32.mrb[31].mxu1 }
 0x2f8   :  { %v3850_v39 = vadd.f32 %v3849_v0, %v3848_v35 }
 0x2f9   :  { %v3154_v21 = vadd.f32 %v3815_v36, %v3084_v29 }
 0x2fb   :  { %v3224_v15 = vadd.f32 %v3850_v39, %v3154_v21 }
 0x2fd   :  { %4504 = vtanh.f32 %v3224_v15  ;;  %3227 = vst [vmem:[#allocation12] sm:$0xff] %v3224_v15 }
 0x2fe   :  { %4657 = shalt.err (!%p4654_p10)
}
 0x2ff   :  { %s4658_s27 = scalar_lea.hbm %s5119_s6, 128 }
 0x300   :  { %p4659_p11 = scmp.ne.s32.totalorder %s5119_s6, %s4658_s27  ;;  %p4662_p12 = scmp.lt.u32.totalorder %s4658_s27, %s5119_s6 }
 0x302   :  { %p4664_p13 = pnand %p4662_p12, %p4659_p11 }
 0x304   :  { %4667 = shalt.err (!%p4664_p13)
}
 0x305   :  { %3249 = dma.vmem_to_hbm [thread:$0]  %s3247_s1, 128, %s5119_s6, [#allocation13]  }
 0x306   :  { %s4712_s12 = smov [#allocation14]  }
 0x307   :  { %s3256_s13 = sshll.u32 %s4712_s12, 4  ;;  %v4505_v50 = vpop.eup %4504  ;;  %s3257_s13 = int_to_ptr.vmem [resolvable:$true] %s3256_s13 }
 0x308   :  { %3229 = vst [vmem:[#allocation14] sm:$0xff] %v4505_v50  ;;  %s4668_s2 = scalar_lea.vmem %s3257_s13, 128  ;;  %p4673_p1 = scmp.lt.s32.totalorder %s3257_s13, %s3257_s13 }
 0x309   :  { %p4669_p0 = scmp.ne.s32.totalorder %s3257_s13, %s4668_s2  ;;  %p4674_p2 = scmp.lt.s32.totalorder %s4668_s2, %s4668_s2 }
 0x30b   :  { %p4675_p3 = por %p4674_p2, %p4673_p1 }
 0x30d   :  { %p4676_p4 = pnand %p4675_p3, %p4669_p0 }
 0x30f   :  { %4679 = shalt.err (!%p4676_p4)
}
 0x310   :  { %s4680_s4 = scalar_lea.hbm %s5120_s7, 128 }
 0x311   :  { %p4681_p5 = scmp.ne.s32.totalorder %s5120_s7, %s4680_s4  ;;  %p4684_p6 = scmp.lt.u32.totalorder %s4680_s4, %s5120_s7 }
 0x313   :  { %p4686_p7 = pnand %p4684_p6, %p4681_p5 }
 0x315   :  { %4689 = shalt.err (!%p4686_p7)
}
 0x316   :  { %3259 = dma.vmem_to_hbm [thread:$0]  %s3257_s13, 128, %s5120_s7, [#allocation13]  }
 0x317   :  { %4696 = dma.done.wait [#allocation4], 4096  }
 0x318   :  { %4697 = vsyncadd [#allocation4], 4294963200 }
 0x319   :  { %4698 = dma.done.wait [#allocation13], 256  }
 0x31a   :  { %4699 = vsyncadd [#allocation13], 4294967040 }
 0x31b   :  { %3269 = vsyncpa [#allocation3], 1 }
 0x31c   :  { %3270 = vsyncpa [#allocation6], 1 }
 0x31d   :  { %3271 = vsyncpa [#allocation9], 1 }
 0x31e   :  { %3272 = vsyncpa [#allocation4], 1 }
 0x31f   :  { %3273 = vsyncpa [#allocation13], 1 }

</bundles_post_ra>
